<compile_context>
chip_gen: v6e
topology: v6e:2x2x1
jax: 0.10.0
libtpu: 0.0.40
codegen_flags: <defaults>
</compile_context>

<pallas_src>
import jax
import jax.numpy as jnp
from jax.experimental import pallas as pl
from jax.experimental.pallas import tpu as pltpu

EPS = 1e-5
KSIZE = 5
COUT_P = 128          # padded output-channel count (lane-dense)
BF16_BYTES = 2
F32_BYTES = 4


# ----------------------------------------------------------------------------
# Pallas kernels
# ----------------------------------------------------------------------------
def _conv_mm_bn_relu_kernel(a_ref, w_ref, scale_ref, shift_ref, o_ref):
    """(tm, Kp) bf16 @ (Kp, 128) bf16 -> f32 acc, fused scale/shift + ReLU."""
    acc = jnp.dot(a_ref[...], w_ref[...], preferred_element_type=jnp.float32)
    y = acc * scale_ref[...] + shift_ref[...]
    o_ref[...] = jnp.maximum(y, 0.0).astype(o_ref.dtype)


def _head_kernel(x_ref, w1_ref, s1_ref, sh1_ref, w2_ref, b2_ref, o_ref):
    """fc1 -> BatchNorm1d (fused scale/shift) -> ReLU -> [dropout=id] -> fc2.

    fc2 is a VPU multiply + cross-lane reduction (avoids a width-1 MXU matmul).
    """
    h = jnp.dot(x_ref[...], w1_ref[...], preferred_element_type=jnp.float32)
    h = jnp.maximum(h * s1_ref[...] + sh1_ref[...], 0.0)
    # Dropout(p=0.5): eval-mode identity.
    out = jnp.sum(h * w2_ref[...], axis=-1, keepdims=True) + b2_ref[...]
    o_ref[...] = out.astype(o_ref.dtype)


# ----------------------------------------------------------------------------
# JAX glue (pure data movement)
# ----------------------------------------------------------------------------
def _im2col(x, k):
    """x: [N, H, W, C] -> patches [N*Ho*Wo, k*k*C] in (dh, dw, cin) order."""
    n, h, w, c = x.shape
    ho, wo = h - k + 1, w - k + 1
    patches = []
    for dh in range(k):
        for dw in range(k):
            patches.append(x[:, dh:dh + ho, dw:dw + wo, :])
    p = jnp.stack(patches, axis=-2)               # [N, Ho, Wo, k*k, C]
    return p.reshape(n * ho * wo, k * k * c), (n, ho, wo)


def _maxpool2(x):
    """MaxPool2d(kernel=2, stride=2), floor mode.  x: [N, H, W, C] (NHWC)."""
    n, h, w, c = x.shape
    ho, wo = h // 2, w // 2
    x = x[:, :ho * 2, :wo * 2, :]
    x = x.reshape(n, ho, 2, wo, 2, c)
    return x.max(axis=(2, 4))


# ----------------------------------------------------------------------------
# Pallas-call wrappers
# ----------------------------------------------------------------------------
def conv_bn_relu(x, w_mat, scale, shift, *, tm):
    """Conv2d(k=5) + BatchNorm2d(inference) + ReLU via a Pallas matmul kernel.

    x:      [N, H, W, C]  bf16 (C = 3 for layer1, 128 padded afterwards)
    w_mat:  [Kp, 128]     bf16, Kp a multiple of 128, zero-padded rows/cols
    scale/shift: [128]    f32, zero on padded channels
    returns [N, Ho, Wo, 128] bf16
    """
    patches, (n, ho, wo) = _im2col(x, KSIZE)      # bf16, K = 25*C
    m, k = patches.shape
    kp = w_mat.shape[0]
    if kp > k:                                    # K alignment pad (layer1 only)
        patches = jnp.pad(patches, ((0, 0), (0, kp - k)))
    mp = pl.cdiv(m, tm) * tm
    if mp > m:
        patches = jnp.pad(patches, ((0, mp - m), (0, 0)))

    cost = pl.CostEstimate(
        flops=2 * mp * kp * COUT_P,
        transcendentals=0,
        bytes_accessed=(mp * kp * BF16_BYTES            # patches
                        + kp * COUT_P * BF16_BYTES      # weights
                        + 2 * COUT_P * F32_BYTES        # scale/shift
                        + mp * COUT_P * BF16_BYTES),    # output
    )

    out = pl.pallas_call(
        _conv_mm_bn_relu_kernel,
        out_shape=jax.ShapeDtypeStruct((mp, COUT_P), jnp.bfloat16),
        grid=(mp // tm,),
        in_specs=[
            pl.BlockSpec((tm, kp), lambda i: (i, 0)),
            pl.BlockSpec((kp, COUT_P), lambda i: (0, 0)),
            pl.BlockSpec((1, COUT_P), lambda i: (0, 0)),
            pl.BlockSpec((1, COUT_P), lambda i: (0, 0)),
        ],
        out_specs=pl.BlockSpec((tm, COUT_P), lambda i: (i, 0)),
        compiler_params=pltpu.CompilerParams(dimension_semantics=("parallel",)),
        cost_estimate=cost,
    )(patches, w_mat, scale.reshape(1, -1), shift.reshape(1, -1))

    return out[:m].reshape(n, ho, wo, COUT_P)


def fc_head(x_flat, w1, scale1, shift1, w2_row, b2):
    """Fused fc1 + BN1d + ReLU + fc2 in a single Pallas kernel.

    x_flat: [N, 1250] bf16; w1: [1280, 128] bf16; scale1/shift1: [128] f32;
    w2_row: [128] f32 (zero on padded hidden units); b2: [1] f32.
    """
    n, k = x_flat.shape
    kp = w1.shape[0]
    hid_p = w1.shape[1]
    n_p = pl.cdiv(n, 8) * 8
    x_p = jnp.pad(x_flat, ((0, n_p - n), (0, kp - k))).astype(jnp.bfloat16)

    cost = pl.CostEstimate(
        flops=2 * n_p * kp * hid_p + 2 * n_p * hid_p,
        transcendentals=0,
        bytes_accessed=(n_p * kp * BF16_BYTES + kp * hid_p * BF16_BYTES
                        + 3 * hid_p * F32_BYTES + n_p * F32_BYTES),
    )

    out = pl.pallas_call(
        _head_kernel,
        out_shape=jax.ShapeDtypeStruct((n_p, 1), jnp.float32),
        cost_estimate=cost,
    )(x_p, w1, scale1.reshape(1, -1), shift1.reshape(1, -1),
      w2_row.reshape(1, -1), b2.reshape(1, 1))
    return out[:n]


# ----------------------------------------------------------------------------
# Parameter construction (deterministic, synthetic) with BN folding + padding
# ----------------------------------------------------------------------------
def _bn_fold(conv_bias, gamma, beta, mean, var):
    scale = gamma / jnp.sqrt(var + EPS)
    shift = (conv_bias - mean) * scale + beta
    return scale, shift


def make_params(key):
    keys = iter(jax.random.split(key, 32))
    params = {"conv": []}
    cin = 3           # logical input channels of this layer
    cin_p = 3         # channel count the padded activation actually carries
    for _ in range(3):
        cout = 50
        w = jax.random.normal(next(keys), (cout, cin, KSIZE, KSIZE), jnp.float32) * 0.05
        b = jax.random.normal(next(keys), (cout,), jnp.float32) * 0.05
        gamma = jax.random.uniform(next(keys), (cout,), jnp.float32, 0.5, 1.5)
        beta = jax.random.normal(next(keys), (cout,), jnp.float32) * 0.1
        mean = jax.random.normal(next(keys), (cout,), jnp.float32) * 0.1
        var = jax.random.uniform(next(keys), (cout,), jnp.float32, 0.5, 1.5)

        # (Cout, Cin, kh, kw) -> (kh, kw, Cin, Cout); zero-pad Cin -> cin_p,
        # Cout -> 128 so padded channels contribute / receive exactly zero.
        w_t = jnp.transpose(w, (2, 3, 1, 0))
        w_t = jnp.pad(w_t, ((0, 0), (0, 0), (0, cin_p - cin), (0, COUT_P - cout)))
        k_real = KSIZE * KSIZE * cin_p
        w_mat = w_t.reshape(k_real, COUT_P)
        kp = pl.cdiv(k_real, 128) * 128           # K alignment (layer1: 75->128)
        w_mat = jnp.pad(w_mat, ((0, kp - k_real), (0, 0))).astype(jnp.bfloat16)

        scale, shift = _bn_fold(b, gamma, beta, mean, var)
        scale = jnp.pad(scale, (0, COUT_P - cout))   # zero scale/shift on pads
        shift = jnp.pad(shift, (0, COUT_P - cout))
        params["conv"].append((w_mat, scale, shift))

        cin = cout
        cin_p = COUT_P    # downstream layers see 128-channel padded activations

    flat = 5 * 5 * 50
    flat_p = pl.cdiv(flat, 128) * 128             # 1250 -> 1280
    hid, hid_p = 50, 128
    w1 = jax.random.normal(next(keys), (flat, hid), jnp.float32) * 0.02
    b1 = jax.random.normal(next(keys), (hid,), jnp.float32) * 0.05
    g1 = jax.random.uniform(next(keys), (hid,), jnp.float32, 0.5, 1.5)
    be1 = jax.random.normal(next(keys), (hid,), jnp.float32) * 0.1
    m1 = jax.random.normal(next(keys), (hid,), jnp.float32) * 0.1
    v1 = jax.random.uniform(next(keys), (hid,), jnp.float32, 0.5, 1.5)
    scale1, shift1 = _bn_fold(b1, g1, be1, m1, v1)

    w1_p = jnp.pad(w1, ((0, flat_p - flat), (0, hid_p - hid))).astype(jnp.bfloat16)
    scale1 = jnp.pad(scale1, (0, hid_p - hid))    # padded hidden units -> 0
    shift1 = jnp.pad(shift1, (0, hid_p - hid))

    w2 = jax.random.normal(next(keys), (hid, 1), jnp.float32) * 0.1
    b2 = jax.random.normal(next(keys), (1,), jnp.float32) * 0.1
    w2_row = jnp.pad(w2[:, 0], (0, hid_p - hid))  # zero weight on padded units

    params["head"] = (w1_p, scale1, shift1, w2_row, b2)
    return params


# ----------------------------------------------------------------------------
# Forward pass (CNN4.forward, eval semantics)
# ----------------------------------------------------------------------------
_LAYER_TM = (2048, 512, 128)   # per-layer M tiles; each layer keeps >= 2 steps


def cnn4_forward(x_nchw, params):
    x = jnp.transpose(x_nchw, (0, 2, 3, 1)).astype(jnp.bfloat16)  # NCHW -> NHWC
    for (w_mat, scale, shift), tm in zip(params["conv"], _LAYER_TM):
        x = conv_bn_relu(x, w_mat, scale, shift, tm=tm)  # [N,Ho,Wo,128] bf16
        x = _maxpool2(x)                                 # MaxPool2d(2)
    n = x.shape[0]
    # Keep only the 50 real channels; PyTorch flattens in (C, H, W) order.
    x_real = x[..., :50]
    x_flat = jnp.transpose(x_real, (0, 3, 1, 2)).reshape(n, -1)   # [N, 1250]
    w1, scale1, shift1, w2_row, b2 = params["head"]
    return fc_head(x_flat, w1, scale1, shift1, w2_row, b2)        # [N, 1]


if __name__ == "__main__":
    key = jax.random.PRNGKey(0)
    k_x, k_p = jax.random.split(key)
    # Input spatial size must be 75x75 so the flatten matches fc1's 5*5*50.
    x = jax.random.normal(k_x, (2, 3, 75, 75), jnp.float32)
    params = make_params(k_p)

    out = cnn4_forward(x, params)
    out = jax.block_until_ready(out)
    assert out.shape == (2, 1)
    print("KERNEL_OK")
</pallas_src>

<mosaic_0001>
module attributes {stable_mosaic.version = 11 : i64} {
  func.func @_conv_mm_bn_relu_kernel(%arg0: i32, %arg1: memref<2048x128xbf16, #tpu.memory_space<vmem>>, %arg2: memref<128x128xbf16, #tpu.memory_space<vmem>>, %arg3: memref<1x128xf32, #tpu.memory_space<vmem>>, %arg4: memref<1x128xf32, #tpu.memory_space<vmem>>, %arg5: memref<2048x128xbf16, #tpu.memory_space<vmem>>) attributes {dimension_semantics = [#tpu.dimension_semantics<parallel>], iteration_bounds = array<i64: 5>, scalar_prefetch = 0 : i64, scratch_operands = 0 : i64, tpu.core_type = #tpu.core_type<tc>, window_params = [{transform_indices = @transform_0, window_bounds = array<i64: 2048, 128>}, {pipeline_mode = #tpu.pipeline_mode<synchronous>, transform_indices = @transform_1, window_bounds = array<i64: 128, 128>}, {pipeline_mode = #tpu.pipeline_mode<synchronous>, transform_indices = @transform_2, window_bounds = array<i64: 1, 128>}, {pipeline_mode = #tpu.pipeline_mode<synchronous>, transform_indices = @transform_3, window_bounds = array<i64: 1, 128>}, {transform_indices = @transform_4, window_bounds = array<i64: 2048, 128>}]} {
    %c0 = arith.constant 0 : index
    %c0_0 = arith.constant 0 : index
    %0 = vector.load %arg1[%c0, %c0_0] : memref<2048x128xbf16, #tpu.memory_space<vmem>>, vector<2048x128xbf16>
    %c0_1 = arith.constant 0 : index
    %c0_2 = arith.constant 0 : index
    %1 = vector.load %arg2[%c0_1, %c0_2] : memref<128x128xbf16, #tpu.memory_space<vmem>>, vector<128x128xbf16>
    %cst = arith.constant dense<0.000000e+00> : vector<2048x128xf32>
    %2 = tpu.matmul %0, %1, %cst {dimension_numbers = #tpu.dot_dimension_numbers<[1], [0], [0], [1], [0, 0, 1, 1], [], []>} : vector<2048x128xbf16>, vector<128x128xbf16>, vector<2048x128xf32> -> vector<2048x128xf32>
    %c0_3 = arith.constant 0 : index
    %c0_4 = arith.constant 0 : index
    %3 = vector.load %arg3[%c0_3, %c0_4] : memref<1x128xf32, #tpu.memory_space<vmem>>, vector<1x128xf32>
    %4 = vector.broadcast %3 : vector<1x128xf32> to vector<2048x128xf32>
    %5 = arith.mulf %2, %4 : vector<2048x128xf32>
    %c0_5 = arith.constant 0 : index
    %c0_6 = arith.constant 0 : index
    %6 = vector.load %arg4[%c0_5, %c0_6] : memref<1x128xf32, #tpu.memory_space<vmem>>, vector<1x128xf32>
    %7 = vector.broadcast %6 : vector<1x128xf32> to vector<2048x128xf32>
    %8 = arith.addf %5, %7 : vector<2048x128xf32>
    %cst_7 = arith.constant 0.000000e+00 : f32
    %9 = vector.broadcast %cst_7 : f32 to vector<2048x128xf32>
    %10 = arith.maximumf %8, %9 : vector<2048x128xf32>
    %11 = arith.truncf %10 : vector<2048x128xf32> to vector<2048x128xbf16>
    %c0_8 = arith.constant 0 : index
    %c0_9 = arith.constant 0 : index
    %12 = vector.load %arg5[%c0_8, %c0_9] : memref<2048x128xbf16, #tpu.memory_space<vmem>>, vector<2048x128xbf16>
    tpu.vector_store %arg5[%c0_8, %c0_9], %11 {strides = array<i32>} : memref<2048x128xbf16, #tpu.memory_space<vmem>>, vector<2048x128xbf16>,
    return
  }
  func.func @transform_0(%arg0: i32) -> (i32, i32) {
    %c0_i32 = arith.constant 0 : i32
    %c0_i32_0 = arith.constant 0 : i32
    return %arg0, %c0_i32 : i32, i32
  }
  func.func @transform_1(%arg0: i32) -> (i32, i32) {
    %c0_i32 = arith.constant 0 : i32
    %c0_i32_0 = arith.constant 0 : i32
    %c0_i32_1 = arith.constant 0 : i32
    return %c0_i32, %c0_i32_0 : i32, i32
  }
  func.func @transform_2(%arg0: i32) -> (i32, i32) {
    %c0_i32 = arith.constant 0 : i32
    %c0_i32_0 = arith.constant 0 : i32
    %c0_i32_1 = arith.constant 0 : i32
    return %c0_i32, %c0_i32_0 : i32, i32
  }
  func.func @transform_3(%arg0: i32) -> (i32, i32) {
    %c0_i32 = arith.constant 0 : i32
    %c0_i32_0 = arith.constant 0 : i32
    %c0_i32_1 = arith.constant 0 : i32
    return %c0_i32, %c0_i32_0 : i32, i32
  }
  func.func @transform_4(%arg0: i32) -> (i32, i32) {
    %c0_i32 = arith.constant 0 : i32
    %c0_i32_0 = arith.constant 0 : i32
    return %arg0, %c0_i32 : i32, i32
  }
}

</mosaic_0001>

<bundles_post_ra>
// kernel: tpu_custom_call.1
= control target key start
LH: loop header
LB: loop body
LE: loop exit
PB: predicated region body
PF: predicated region fallthrough
CT: control target
= control target key end

     0   :  { %9 = vsyncpa [#allocation3], 0  ;;  %s7873_s0 = inlined_call_operand.hbm [shape: bf16[10240,128], index: 0, kind: input, shape index: {}]   ;;  %s7874_s1 = inlined_call_operand.hbm [shape: bf16[128,128], index: 1, kind: input, shape index: {}]   ;;  %s7875_s2 = inlined_call_operand.hbm [shape: f32[1,128], index: 2, kind: input, shape index: {}]   ;;  %s7876_s3 = inlined_call_operand.hbm [shape: f32[1,128], index: 3, kind: input, shape index: {}]   ;;  %s7877_s4 = inlined_call_operand.hbm [shape: bf16[10240,128], index: 4, kind: output, shape index: {}]  }
   0x1   :  { %11 = vsyncpa [#allocation3 + $0x1], 0 }
   0x2   :  { %12 = vsyncpa [#allocation6], 0 }
   0x3   :  { %13 = vsyncpa [#allocation9], 0 }
   0x4   :  { %14 = vsyncpa [#allocation4], 0 }
   0x5   :  { %16 = vsyncpa [#allocation4 + $0x1], 0  ;;  %s6880_s15 = smov 0   ;;  %s6882_s16 = smov 0  }
   0x6   :  { %s6884_s17 = smov 0   ;;  %s6886_s18 = smov 0  }
   0x7 LB: > { %s6901_s19 = sadd.s32 4294967295, %s6844_s18   ;;  %s4582_s20 = sadd.s32 4294967294, %s6844_s18   ;;  %s6844_s18 = sphi %s6886_s18, %s7900_s18   ;;  %s6840_s17 = sphi %s6884_s17, %s7899_s17   ;;  %s6836_s16 = sphi %s6882_s16, %s7898_s16   ;;  %s6832_s15 = sphi %s6880_s15, %s7897_s15  }
   0x8   : > { %p42_p0 = scmp.ne.s32.totalorder %s6836_s16, %s6832_s15  ;;  %p7878_p1 = scmp.eq.s32.totalorder %s6901_s19, 0 }
   0x9   : > { %p135_p3 = scmp.eq.s32.totalorder %s4582_s20, 4  ;;  %p4583_p5 = scmp.ge.s32.totalorder %s6844_s18, 1 }
   0xa   : > { %p6910_p4 = por %p7878_p1, %p42_p0  ;;  %p142_p7 = scmp.lt.s32.totalorder %s6844_s18, 6 }
   0xb   : > { %p6915_p6 = por %p135_p3, %p42_p0  ;;  %s6846_s24 = smov [#allocation5]  }
   0xc   : > { %s7882_s21 = scalar_select %p6910_p4, 1, 0 }
   0xd   : > { %s7883_s22 = scalar_select %p6915_p6, 1, 0 }
   0xe   : > { %p6920_p8 = pnand %p4583_p5, %p142_p7  ;;  %s154_s25 = sshll.u32 %s6846_s24, 4  ;;  %s155_s25 = int_to_ptr.vmem [resolvable:$true] %s154_s25 }
   0xf   : > { %s6847_s27 = smov [#allocation7]   ;;  %s6848_s29 = smov [#allocation8]  }
  0x10   : > { %s7884_s23 = scalar_select %p6920_p8, 1, 0 }
  0x11   : > { %p6461_p9 = pneg %p6920_p8  ;;  %s168_s28 = sshll.u32 %s6847_s27, 4  ;;  %s169_s28 = int_to_ptr.vmem [resolvable:$true] %s168_s28 }
  0x12   : > { %s179_s30 = sshll.u32 %s6848_s29, 4  ;;  %s6677_s5 = scalar_lea.vmem %s155_s25, 1024  ;;  %s180_s30 = int_to_ptr.vmem [resolvable:$true] %s179_s30 }
  0x13   : > { %p6928_p10 = pnand %p6461_p9, %p7878_p1  ;;  %p6678_p12 = scmp.ne.s32.totalorder %s155_s25, %s6677_s5 }
  0x14   : > { %p6685_p3 = scmp.lt.s32.totalorder %s155_s25, %s155_s25  ;;  %p6686_p5 = scmp.lt.s32.totalorder %s6677_s5, %s6677_s5 }
  0x15   : > { %p6668_p11 = pneg %p6928_p10 }
  0x16   : > { %p6687_p7 = por %p6686_p5, %p6685_p3 }
  0x17   : > { %p6680_p13 = pnand %p6678_p12, %p6668_p11 }
  0x19   : > { %p6681_p0 = pneg %p6680_p13 }
  0x1b   : > { %p6688_p9 = pnand %p6687_p7, %p6681_p0 }
  0x1d   : > { %6691 = shalt.err (!%p6688_p9)
}
  0x1e   : > { %s6849_s6 = smov 64   ;;  %s6850_s7 = smov 4  }
  0x1f   : > { %6464 = dma.hbm_to_vmem [thread:$0]  (!%p6928_p10), %s7874_s1, 1024, %s155_s25, [#allocation6], %s6849_s6, %s6849_s6, %s6850_s7  }
  0x20   : > { %s6703_s10 = scalar_lea.vmem %s169_s28, 16  ;;  %s6710_s11 = scalar_lea.vmem %s169_s28, 32 }
  0x21   : > { %p6704_p12 = scmp.ne.s32.totalorder %s169_s28, %s6703_s10  ;;  %p6711_p0 = scmp.lt.s32.totalorder %s169_s28, %s169_s28 }
  0x22   : > { %p6712_p5 = scmp.lt.s32.totalorder %s6710_s11, %s6703_s10 }
  0x23   : > { %p6706_p13 = pnand %p6704_p12, %p6668_p11 }
  0x24   : > { %p6713_p7 = por %p6712_p5, %p6711_p0 }
  0x25   : > { %p6707_p3 = pneg %p6706_p13 }
  0x27   : > { %p6714_p9 = pnand %p6713_p7, %p6707_p3 }
  0x29   : > { %6717 = shalt.err (!%p6714_p9)
}
  0x2a   : > { %6467 = dma.hbm_to_vmem [thread:$0]  (!%p6928_p10), %s7875_s2, 16, %s169_s28, [#allocation6]  }
  0x2b   : > { %s6729_s14 = scalar_lea.vmem %s180_s30, 16  ;;  %s6736_s20 = scalar_lea.vmem %s180_s30, 32 }
  0x2c   : > { %p6730_p1 = scmp.ne.s32.totalorder %s180_s30, %s6729_s14  ;;  %p6737_p2 = scmp.lt.s32.totalorder %s180_s30, %s180_s30 }
  0x2d   : > { %p6738_p6 = scmp.lt.s32.totalorder %s6736_s20, %s6729_s14 }
  0x2e   : > { %p6732_p12 = pnand %p6730_p1, %p6668_p11 }
  0x2f   : > { %p6739_p0 = por %p6738_p6, %p6737_p2 }
  0x30   : > { %p6733_p13 = pneg %p6732_p12 }
  0x32   : > { %p6740_p3 = pnand %p6739_p0, %p6733_p13 }
  0x34   : > { %6743 = shalt.err (!%p6740_p3)
}
  0x35   : > { %6470 = dma.hbm_to_vmem [thread:$0]  (!%p6928_p10), %s7876_s3, 16, %s180_s30, [#allocation9]  }
  0x36   : > { %s6962_s27 = sadd.s32 1, %s6844_s18   ;;  %s29_s26 = sadd.s32 1, %s6840_s17 }
  0x37   : > { %s26_s28 = ssub.s32 %s6844_s18, %s6962_s27  ;;  %p36_p2 = scmp.ne.s32.totalorder %s6840_s17, %s6836_s16 }
  0x38   : > { %p27_p1 = scmp.eq.s32.totalorder %s26_s28, 0  ;;  %p37_p6 = scmp.eq.s32.totalorder %s6844_s18, 0 }
  0x39   : > { %p6482_p11 = scmp.lt.s32.totalorder %s6844_s18, 5  ;;  %p7886_p7 = scmp.eq.s32.totalorder %s6901_s19, 4 }
  0x3a   : > { %s6972_s29 = scalar_select %p27_p1, %s6840_s17, %s29_s26  }
  0x3b   : > { %p38_p5 = por %p37_p6, %p36_p2  ;;  %p6976_p9 = por %p7886_p7, %p36_p2 }
  0x3c   : > { %s190_s8 = sand.u32 1, %s6840_s17   ;;  %s4996_s9 = sshll.u32 %s6844_s18, 14 }
  0x3d   : > { %s7887_s5 = scalar_select %p6976_p9, 1, 0 }
  0x3e   : > { %s4588_s30 = sshll.u32 %s190_s8, 10  ;;  %s6985_s12 = scalar_lea.hbm %s7873_s0, %s4996_s9 }
  0x3f   : > { %s194_s13 = scalar_lea.vmem [#allocation2], %s4588_s30  ;;  %p6987_p10 = pnand %p6482_p11, %p38_p5 }
  0x40   : > { %s201_s14 = sshll.u32 %s194_s13, 4  ;;  %s6993_s24 = scalar_lea.sflag [#allocation3], %s190_s8  ;;  %s6991_s14 = int_to_ptr.vmem [resolvable:$true] %s201_s14 }
  0x41   : > { %s6744_s25 = scalar_lea.hbm %s6985_s12, 16384  ;;  %p6746_p13 = pneg %p6987_p10 }
  0x42   : > { %p6745_p12 = scmp.ne.s32.totalorder %s6985_s12, %s6744_s25  ;;  %s6749_s9 = scalar_lea.hbm %s7873_s0, 81920 }
  0x43   : > { %p6750_p1 = scmp.lt.s32.totalorder %s6985_s12, %s7873_s0  ;;  %p6751_p2 = scmp.lt.s32.totalorder %s6749_s9, %s6744_s25 }
  0x44   : > { %p6747_p0 = pnand %p6746_p13, %p6745_p12 }
  0x45   : > { %p6752_p6 = por %p6751_p2, %p6750_p1 }
  0x46   : > { %p6748_p3 = pneg %p6747_p0 }
  0x48   : > { %p6753_p11 = pnand %p6752_p6, %p6748_p3 }
  0x4a   : > { %6756 = shalt.err (!%p6753_p11)
}
  0x4b   : > { %s6757_s8 = scalar_lea.vmem %s6991_s14, 16384  ;;  %s6851_s11 = smov [#allocation2]  }
  0x4c   : > { %p6758_p5 = scmp.ne.s32.totalorder %s6991_s14, %s6757_s8  ;;  %s6762_s13 = sshll.u32 %s6851_s11, 4  ;;  %s6763_s13 = int_to_ptr.vmem [resolvable:$false] %s6762_s13 }
  0x4d   : > { %s6764_s28 = scalar_lea.vmem %s6763_s13, 32768  ;;  %p6765_p0 = scmp.lt.s32.totalorder %s6991_s14, %s6763_s13 }
  0x4e   : > { %p6760_p7 = pnand %p6758_p5, %p6746_p13  ;;  %p6766_p9 = scmp.lt.s32.totalorder %s6764_s28, %s6757_s8 }
  0x50   : > { %p6761_p12 = pneg %p6760_p7  ;;  %p6767_p4 = por %p6766_p9, %p6765_p0 }
  0x52   : > { %p6768_p8 = pnand %p6767_p4, %p6761_p12 }
  0x54   : > { %6771 = shalt.err (!%p6768_p8)
}
  0x55   : > { %6474 = dma.hbm_to_vmem [thread:$0]  (!%p6987_p10), %s6985_s12, 16384, %s6991_s14, %s6993_s24, %s6849_s6, %s6849_s6, %s6850_s7  }
  0x56   : > { %p7889_p13 = scmp.ne.s32.totalorder %s7884_s23, 0 }
  0x57   : > { %s7020_s25 = sand.u32 (!%p7889_p13), 1, %s6836_s16   ;;  %p7890_p4 = scmp.ne.s32.totalorder (!%p7889_p13), %s7882_s21, 0 }
  0x58   : > { %213 = sbr.rel (%p7889_p13) target bundleno = 602 (0x25a), region = 36  ;;  %s4592_s26 = sshll.u32 (!%p7889_p13), %s7020_s25, 10 }
  0x59   : > { %s216_s9 = scalar_lea.sflag (!%p7889_p13), [#allocation3], %s7020_s25  ;;  %s7026_s20 = scalar_lea.vmem (!%p7889_p13), [#allocation2], %s4592_s26 }
  0x5d   : > { %6815 = dma.done.wait (%p7890_p4), %s216_s9, 16384  }
  0x5e   : > { %6817 = vsyncadd (%p7890_p4), %s216_s9, 4294950912  ;;  %p7891_p8 = scmp.eq.s32.totalorder %s6901_s19, 0 }
  0x60   : > { %6819 = dma.done.wait (%p7891_p8), [#allocation6], 1040   ;;  %p7892_p9 = pmov %p7891_p8 }
  0x61   : > { %p7893_p10 = pmov %p7891_p8 }
  0x62   : > { %6821 = vsyncadd (%p7892_p9), [#allocation6], 4294966256 }
  0x63   : > { %6823 = dma.done.wait (%p7893_p10), [#allocation9], 16   ;;  %p7894_p3 = pmov %p7891_p8 }
  0x64   : > { %v6526_v0 = vld [vmem:[#allocation5 + $0x38] sm:$0xff]   ;;  %v6527_v1 = vld [vmem:[#allocation5 + $0x30] sm:$0xff]   ;;  %v6528_v2 = vld [vmem:[#allocation5 + $0x28] sm:$0xff]   ;;  %s7175_s21 = scalar_lea.vmem [#allocation10], %s4592_s26  ;;  %s5253_s23 = sshll.u32 %s6901_s19, 14 }
  0x65   : > { %6825 = vsyncadd (%p7894_p3), [#allocation9], 4294967280  ;;  %6157 = vmatprep.subr.bf16.mxu0 %v6526_v0  ;;  %6429 = vmatprep.subr.bf16.mxu1 %v6526_v0  ;;  %v6529_v3 = vld [vmem:[#allocation5 + $0x20] sm:$0xff]   ;;  %v6530_v6 = vld [vmem:[#allocation5 + $0x18] sm:$0xff]   ;;  %s4480_s6 = sshll.u32 %s7175_s21, 4  ;;  %s7825_s19 = scalar_lea.hbm %s7877_s4, %s5253_s23  ;;  %s7827_s6 = int_to_ptr.vmem [resolvable:$true] %s4480_s6 }
  0x66   : > { %6158 = vmatpush3.bf16.msra.mxu0 %v6526_v0  ;;  %6437 = vmatpush3.bf16.msra.mxu1 %v6526_v0  ;;  %v6534_v4 = vld [vmem:[%s7026_s20] sm:$0xff]   ;;  %v6531_v7 = vld [vmem:[#allocation5 + $0x10] sm:$0xff]   ;;  %v6532_v8 = vld [vmem:[#allocation5 + $0x8] sm:$0xff]   ;;  %s4467_s14 = scalar_lea.sflag [#allocation4], %s7020_s25  ;;  %s6772_s24 = scalar_lea.vmem %s7827_s6, 16384 }
  0x67   : > { %6159 = vmatprep.subr.bf16.mxu0 %v6527_v1  ;;  %6430 = vmatprep.subr.bf16.mxu1 %v6527_v1  ;;  %v6535_v5 = vld [vmem:[%s7026_s20 + $0x200] sm:$0xff]   ;;  %v6536_v10 = vld [vmem:[%s7026_s20 + $0x8] sm:$0xff]   ;;  %v6538_v12 = vld [vmem:[%s7026_s20 + $0x10] sm:$0xff]   ;;  %p6773_p1 = scmp.ne.s32.totalorder %s7827_s6, %s6772_s24  ;;  %p7895_p2 = scmp.ne.s32.totalorder %s7887_s5, 0 }
  0x68   : > { %6173 = vmatprep.mubr.bf16.mxu0 %v6534_v4  ;;  %6301 = vmatprep.mubr.bf16.mxu1 %v6535_v5  ;;  %v6533_v9 = vld [vmem:[#allocation5] sm:$0xff]   ;;  %v6537_v11 = vld [vmem:[%s7026_s20 + $0x208] sm:$0xff]   ;;  %v6539_v13 = vld [vmem:[%s7026_s20 + $0x210] sm:$0xff]   ;;  %s6852_s30 = smov [#allocation10]  }
  0x69   : > { %v6540_v14 = vld [vmem:[%s7026_s20 + $0x18] sm:$0xff]   ;;  %v6542_v16 = vld [vmem:[%s7026_s20 + $0x20] sm:$0xff]   ;;  %v6544_v18 = vld [vmem:[%s7026_s20 + $0x28] sm:$0xff]   ;;  %p6774_p6 = pnand %p6773_p1, %p7895_p2  ;;  %s6776_s10 = sshll.u32 %s6852_s30, 4  ;;  %s6777_s10 = int_to_ptr.vmem [resolvable:$false] %s6776_s10 }
  0x6a   : > { %6160 = vmatpush3.bf16.msra.mxu0 %v6527_v1  ;;  %6438 = vmatpush3.bf16.msra.mxu1 %v6527_v1  ;;  %v6541_v15 = vld [vmem:[%s7026_s20 + $0x218] sm:$0xff]   ;;  %v6543_v17 = vld [vmem:[%s7026_s20 + $0x220] sm:$0xff]   ;;  %v6545_v19 = vld [vmem:[%s7026_s20 + $0x228] sm:$0xff]   ;;  %s6778_s8 = scalar_lea.vmem %s6777_s10, 32768  ;;  %p6779_p5 = scmp.lt.s32.totalorder %s7827_s6, %s6777_s10 }
  0x6b   : > { %6161 = vmatprep.subr.bf16.mxu0 %v6528_v2  ;;  %6431 = vmatprep.subr.bf16.mxu1 %v6528_v2  ;;  %v6546_v20 = vld [vmem:[%s7026_s20 + $0x30] sm:$0xff]   ;;  %v6548_v22 = vld [vmem:[%s7026_s20 + $0x38] sm:$0xff]   ;;  %v6550_v24 = vld [vmem:[%s7026_s20 + $0x40] sm:$0xff]   ;;  %p6775_p11 = pneg %p6774_p6  ;;  %p6780_p7 = scmp.lt.s32.totalorder %s6778_s8, %s6772_s24 }
  0x6c   : > { %v6547_v21 = vld [vmem:[%s7026_s20 + $0x230] sm:$0xff]   ;;  %v6549_v23 = vld [vmem:[%s7026_s20 + $0x238] sm:$0xff]   ;;  %v6551_v25 = vld [vmem:[%s7026_s20 + $0x240] sm:$0xff]  }
  0x6d   : > { %v6552_v26 = vld [vmem:[%s7026_s20 + $0x48] sm:$0xff]   ;;  %v6554_v28 = vld [vmem:[%s7026_s20 + $0x50] sm:$0xff]   ;;  %v6556_v30 = vld [vmem:[%s7026_s20 + $0x58] sm:$0xff]   ;;  %p6781_p12 = por %p6780_p7, %p6779_p5 }
  0x6e   : > { %6162 = vmatpush3.bf16.msra.mxu0 %v6528_v2  ;;  %6439 = vmatpush3.bf16.msra.mxu1 %v6528_v2  ;;  %v6553_v27 = vld [vmem:[%s7026_s20 + $0x248] sm:$0xff]   ;;  %v6555_v29 = vld [vmem:[%s7026_s20 + $0x250] sm:$0xff]   ;;  %v6557_v31 = vld [vmem:[%s7026_s20 + $0x258] sm:$0xff]  }
  0x6f   : > { %6163 = vmatprep.subr.bf16.mxu0 %v6529_v3  ;;  %6432 = vmatprep.subr.bf16.mxu1 %v6529_v3  ;;  %v6558_v32 = vld [vmem:[%s7026_s20 + $0x60] sm:$0xff]   ;;  %v6560_v34 = vld [vmem:[%s7026_s20 + $0x68] sm:$0xff]   ;;  %v6562_v36 = vld [vmem:[%s7026_s20 + $0x70] sm:$0xff]   ;;  %p6782_p0 = pnand %p6781_p12, %p6775_p11 }
  0x70   : > { %v6559_v33 = vld [vmem:[%s7026_s20 + $0x260] sm:$0xff]   ;;  %v6561_v35 = vld [vmem:[%s7026_s20 + $0x268] sm:$0xff]   ;;  %v6563_v37 = vld [vmem:[%s7026_s20 + $0x270] sm:$0xff]  }
  0x71   : > { %v6564_v38 = vld [vmem:[%s7026_s20 + $0x78] sm:$0xff]   ;;  %v6566_v40 = vld [vmem:[%s7026_s20 + $0x80] sm:$0xff]   ;;  %v6568_v42 = vld [vmem:[%s7026_s20 + $0x88] sm:$0xff]  }
  0x72   : > { %6164 = vmatpush3.bf16.msra.mxu0 %v6529_v3  ;;  %6440 = vmatpush3.bf16.msra.mxu1 %v6529_v3  ;;  %v6565_v39 = vld [vmem:[%s7026_s20 + $0x278] sm:$0xff]   ;;  %v6567_v41 = vld [vmem:[%s7026_s20 + $0x280] sm:$0xff]   ;;  %v6569_v43 = vld [vmem:[%s7026_s20 + $0x288] sm:$0xff]  }
  0x73   : > { %6165 = vmatprep.subr.bf16.mxu0 %v6530_v6  ;;  %6433 = vmatprep.subr.bf16.mxu1 %v6530_v6  ;;  %v6570_v44 = vld [vmem:[%s7026_s20 + $0x90] sm:$0xff]   ;;  %v6572_v46 = vld [vmem:[%s7026_s20 + $0x98] sm:$0xff]   ;;  %v6574_v48 = vld [vmem:[%s7026_s20 + $0xa0] sm:$0xff]  }
  0x74   : > { %v6571_v45 = vld [vmem:[%s7026_s20 + $0x290] sm:$0xff]   ;;  %v6573_v47 = vld [vmem:[%s7026_s20 + $0x298] sm:$0xff]   ;;  %v6575_v49 = vld [vmem:[%s7026_s20 + $0x2a0] sm:$0xff]  }
  0x75   : > { %v6576_v50 = vld [vmem:[%s7026_s20 + $0xa8] sm:$0xff]   ;;  %v6578_v52 = vld [vmem:[%s7026_s20 + $0xb0] sm:$0xff]   ;;  %v6580_v54 = vld [vmem:[%s7026_s20 + $0xb8] sm:$0xff]  }
  0x76   : > { %6166 = vmatpush3.bf16.msra.mxu0 %v6530_v6  ;;  %6441 = vmatpush3.bf16.msra.mxu1 %v6530_v6  ;;  %v6577_v51 = vld [vmem:[%s7026_s20 + $0x2a8] sm:$0xff]   ;;  %v6579_v53 = vld [vmem:[%s7026_s20 + $0x2b0] sm:$0xff]   ;;  %v6581_v55 = vld [vmem:[%s7026_s20 + $0x2b8] sm:$0xff]  }
  0x77   : > { %6167 = vmatprep.subr.bf16.mxu0 %v6531_v7  ;;  %6434 = vmatprep.subr.bf16.mxu1 %v6531_v7  ;;  %v6582_v56 = vld [vmem:[%s7026_s20 + $0xc0] sm:$0xff]   ;;  %v6584_v58 = vld [vmem:[%s7026_s20 + $0xc8] sm:$0xff]   ;;  %v6586_v60 = vld [vmem:[%s7026_s20 + $0xd0] sm:$0xff]  }
  0x78   : > { %v6583_v57 = vld [vmem:[%s7026_s20 + $0x2c0] sm:$0xff]   ;;  %v6585_v59 = vld [vmem:[%s7026_s20 + $0x2c8] sm:$0xff]   ;;  %v6587_v61 = vld [vmem:[%s7026_s20 + $0x2d0] sm:$0xff]  }
  0x79   : > { %v6588_v62 = vld [vmem:[%s7026_s20 + $0xd8] sm:$0xff]   ;;  %v6590_v0 = vld [vmem:[%s7026_s20 + $0xe0] sm:$0xff]   ;;  %v6592_v2 = vld [vmem:[%s7026_s20 + $0xe8] sm:$0xff]  }
  0x7a   : > { %6168 = vmatpush3.bf16.msra.mxu0 %v6531_v7  ;;  %6442 = vmatpush3.bf16.msra.mxu1 %v6531_v7  ;;  %v6589_v63 = vld [vmem:[%s7026_s20 + $0x2d8] sm:$0xff]   ;;  %v6591_v1 = vld [vmem:[%s7026_s20 + $0x2e0] sm:$0xff]   ;;  %v6593_v3 = vld [vmem:[%s7026_s20 + $0x2e8] sm:$0xff]  }
  0x7b   : > { %6169 = vmatprep.subr.bf16.mxu0 %v6532_v8  ;;  %6435 = vmatprep.subr.bf16.mxu1 %v6532_v8  ;;  %v6594_v4 = vld [vmem:[%s7026_s20 + $0xf0] sm:$0xff]   ;;  %v6596_v6 = vld [vmem:[%s7026_s20 + $0xf8] sm:$0xff]  }
  0x7c   : > { %v6595_v5 = vld [vmem:[%s7026_s20 + $0x2f0] sm:$0xff]   ;;  %v6597_v7 = vld [vmem:[%s7026_s20 + $0x2f8] sm:$0xff]  }
  0x7e   : > { %6170 = vmatpush3.bf16.msra.mxu0 %v6532_v8  ;;  %6443 = vmatpush3.bf16.msra.mxu1 %v6532_v8  ;;  %v6598_v8 = vld [vmem:[%s7026_s20 + $0x100] sm:$0xff]  }
  0x7f   : > { %6171 = vmatprep.subr.bf16.mxu0 %v6533_v9  ;;  %6436 = vmatprep.subr.bf16.mxu1 %v6533_v9 }
  0x82   : > { %6172 = vmatpush3.bf16.msra.mxu0 %v6533_v9  ;;  %6444 = vmatpush3.bf16.msra.mxu1 %v6533_v9  ;;  %v6599_v9 = vld [vmem:[%s7026_s20 + $0x300] sm:$0xff]  }
  0x85   : > { %6174 = vmatmul.mubr.bf16.vlgmr.msra.gmra.mxu0 %v6536_v10  ;;  %6302 = vmatmul.mubr.bf16.vlgmr.msra.gmra.mxu1 %v6537_v11  ;;  %v6600_v10 = vld [vmem:[%s7026_s20 + $0x108] sm:$0xff]  }
  0x86   : > { %6177 = vmatprep.mubr.bf16.mxu0 %v6538_v12  ;;  %6305 = vmatprep.mubr.bf16.mxu1 %v6539_v13  ;;  %v6601_v11 = vld [vmem:[%s7026_s20 + $0x308] sm:$0xff]   ;;  %v6602_v12 = vld [vmem:[%s7026_s20 + $0x110] sm:$0xff]  }
  0x87   : > { %v6603_v13 = vld [vmem:[%s7026_s20 + $0x310] sm:$0xff]  }
  0x8d   : > { %6178 = vmatmul.mubr.bf16.gmra.mxu0 %v6540_v14  ;;  %6306 = vmatmul.mubr.bf16.gmra.mxu1 %v6541_v15  ;;  %v6604_v14 = vld [vmem:[%s7026_s20 + $0x118] sm:$0xff]  }
  0x8e   : > { %6181 = vmatprep.mubr.bf16.mxu0 %v6542_v16  ;;  %6309 = vmatprep.mubr.bf16.mxu1 %v6543_v17  ;;  %v6605_v15 = vld [vmem:[%s7026_s20 + $0x318] sm:$0xff]   ;;  %v6606_v16 = vld [vmem:[%s7026_s20 + $0x120] sm:$0xff]  }
  0x8f   : > { %v6607_v17 = vld [vmem:[%s7026_s20 + $0x320] sm:$0xff]  }
  0x95   : > { %6182 = vmatmul.mubr.bf16.gmra.mxu0 %v6544_v18  ;;  %6310 = vmatmul.mubr.bf16.gmra.mxu1 %v6545_v19  ;;  %v6608_v18 = vld [vmem:[%s7026_s20 + $0x128] sm:$0xff]  }
  0x96   : > { %6185 = vmatprep.mubr.bf16.mxu0 %v6546_v20  ;;  %6313 = vmatprep.mubr.bf16.mxu1 %v6547_v21  ;;  %v6609_v19 = vld [vmem:[%s7026_s20 + $0x328] sm:$0xff]   ;;  %v6610_v20 = vld [vmem:[%s7026_s20 + $0x130] sm:$0xff]  }
  0x97   : > { %v6611_v21 = vld [vmem:[%s7026_s20 + $0x330] sm:$0xff]  }
  0x9d   : > { %6186 = vmatmul.mubr.bf16.gmra.mxu0 %v6548_v22  ;;  %6314 = vmatmul.mubr.bf16.gmra.mxu1 %v6549_v23  ;;  %v6612_v22 = vld [vmem:[%s7026_s20 + $0x138] sm:$0xff]  }
  0x9e   : > { %6189 = vmatprep.mubr.bf16.mxu0 %v6550_v24  ;;  %6317 = vmatprep.mubr.bf16.mxu1 %v6551_v25  ;;  %v6613_v23 = vld [vmem:[%s7026_s20 + $0x338] sm:$0xff]   ;;  %v6614_v24 = vld [vmem:[%s7026_s20 + $0x140] sm:$0xff]  }
  0x9f   : > { %v6615_v25 = vld [vmem:[%s7026_s20 + $0x340] sm:$0xff]  }
  0xa5   : > { %6190 = vmatmul.mubr.bf16.gmra.mxu0 %v6552_v26  ;;  %6318 = vmatmul.mubr.bf16.gmra.mxu1 %v6553_v27  ;;  %v6616_v26 = vld [vmem:[%s7026_s20 + $0x148] sm:$0xff]  }
  0xa6   : > { %6193 = vmatprep.mubr.bf16.mxu0 %v6554_v28  ;;  %6321 = vmatprep.mubr.bf16.mxu1 %v6555_v29  ;;  %v6617_v27 = vld [vmem:[%s7026_s20 + $0x348] sm:$0xff]   ;;  %v6618_v28 = vld [vmem:[%s7026_s20 + $0x150] sm:$0xff]  }
  0xa7   : > { %v6619_v29 = vld [vmem:[%s7026_s20 + $0x350] sm:$0xff]  }
  0xad   : > { %6194 = vmatmul.mubr.bf16.gmra.mxu0 %v6556_v30  ;;  %6322 = vmatmul.mubr.bf16.gmra.mxu1 %v6557_v31  ;;  %v6620_v30 = vld [vmem:[%s7026_s20 + $0x158] sm:$0xff]  }
  0xae   : > { %6197 = vmatprep.mubr.bf16.mxu0 %v6558_v32  ;;  %6325 = vmatprep.mubr.bf16.mxu1 %v6559_v33  ;;  %v6621_v31 = vld [vmem:[%s7026_s20 + $0x358] sm:$0xff]   ;;  %v6622_v32 = vld [vmem:[%s7026_s20 + $0x160] sm:$0xff]  }
  0xaf   : > { %v6623_v33 = vld [vmem:[%s7026_s20 + $0x360] sm:$0xff]  }
  0xb5   : > { %6198 = vmatmul.mubr.bf16.gmra.mxu0 %v6560_v34  ;;  %6326 = vmatmul.mubr.bf16.gmra.mxu1 %v6561_v35  ;;  %v6624_v34 = vld [vmem:[%s7026_s20 + $0x168] sm:$0xff]  }
  0xb6   : > { %6201 = vmatprep.mubr.bf16.mxu0 %v6562_v36  ;;  %6329 = vmatprep.mubr.bf16.mxu1 %v6563_v37  ;;  %v6625_v35 = vld [vmem:[%s7026_s20 + $0x368] sm:$0xff]   ;;  %v6626_v36 = vld [vmem:[%s7026_s20 + $0x170] sm:$0xff]  }
  0xb7   : > { %v6627_v37 = vld [vmem:[%s7026_s20 + $0x370] sm:$0xff]  }
  0xbd   : > { %6202 = vmatmul.mubr.bf16.gmra.mxu0 %v6564_v38  ;;  %6330 = vmatmul.mubr.bf16.gmra.mxu1 %v6565_v39  ;;  %v6628_v38 = vld [vmem:[%s7026_s20 + $0x178] sm:$0xff]  }
  0xbe   : > { %6205 = vmatprep.mubr.bf16.mxu0 %v6566_v40  ;;  %6333 = vmatprep.mubr.bf16.mxu1 %v6567_v41  ;;  %v6629_v39 = vld [vmem:[%s7026_s20 + $0x378] sm:$0xff]   ;;  %v6630_v40 = vld [vmem:[%s7026_s20 + $0x180] sm:$0xff]  }
  0xbf   : > { %v6631_v41 = vld [vmem:[%s7026_s20 + $0x380] sm:$0xff]  }
  0xc5   : > { %6206 = vmatmul.mubr.bf16.gmra.mxu0 %v6568_v42  ;;  %6334 = vmatmul.mubr.bf16.gmra.mxu1 %v6569_v43  ;;  %v6632_v42 = vld [vmem:[%s7026_s20 + $0x188] sm:$0xff]  }
  0xc6   : > { %6209 = vmatprep.mubr.bf16.mxu0 %v6570_v44  ;;  %6337 = vmatprep.mubr.bf16.mxu1 %v6571_v45  ;;  %v6633_v43 = vld [vmem:[%s7026_s20 + $0x388] sm:$0xff]   ;;  %v6634_v44 = vld [vmem:[%s7026_s20 + $0x190] sm:$0xff]  }
  0xc7   : > { %v6635_v45 = vld [vmem:[%s7026_s20 + $0x390] sm:$0xff]  }
  0xcd   : > { %6210 = vmatmul.mubr.bf16.gmra.mxu0 %v6572_v46  ;;  %6338 = vmatmul.mubr.bf16.gmra.mxu1 %v6573_v47  ;;  %v7142_v46 = vld [vmem:[#allocation7] ss:$0 sm:$0xff] }
  0xce   : > { %6213 = vmatprep.mubr.bf16.mxu0 %v6574_v48  ;;  %6341 = vmatprep.mubr.bf16.mxu1 %v6575_v49 }
  0xd5   : > { %6214 = vmatmul.mubr.bf16.gmra.mxu0 %v6576_v50  ;;  %6342 = vmatmul.mubr.bf16.gmra.mxu1 %v6577_v51  ;;  %v7146_v51 = vld [vmem:[#allocation8] ss:$0 sm:$0xff] }
  0xd6   : > { %6217 = vmatprep.mubr.bf16.mxu0 %v6578_v52  ;;  %6345 = vmatprep.mubr.bf16.mxu1 %v6579_v53 }
  0xdd   : > { %6218 = vmatmul.mubr.bf16.gmra.mxu0 %v6580_v54  ;;  %6346 = vmatmul.mubr.bf16.gmra.mxu1 %v6581_v55 }
  0xde   : > { %6221 = vmatprep.mubr.bf16.mxu0 %v6582_v56  ;;  %6349 = vmatprep.mubr.bf16.mxu1 %v6583_v57 }
  0xe5   : > { %6222 = vmatmul.mubr.bf16.gmra.mxu0 %v6584_v58  ;;  %6350 = vmatmul.mubr.bf16.gmra.mxu1 %v6585_v59  ;;  %v6636_v58 = vld [vmem:[%s7026_s20 + $0x198] sm:$0xff]  }
  0xe6   : > { %6225 = vmatprep.mubr.bf16.mxu0 %v6586_v60  ;;  %6353 = vmatprep.mubr.bf16.mxu1 %v6587_v61  ;;  %v6637_v59 = vld [vmem:[%s7026_s20 + $0x398] sm:$0xff]  }
  0xed   : > { %6226 = vmatmul.mubr.bf16.gmra.mxu0 %v6588_v62  ;;  %6354 = vmatmul.mubr.bf16.gmra.mxu1 %v6589_v63  ;;  %v6638_v62 = vld [vmem:[%s7026_s20 + $0x1a0] sm:$0xff]  }
  0xee   : > { %6229 = vmatprep.mubr.bf16.mxu0 %v6590_v0  ;;  %6357 = vmatprep.mubr.bf16.mxu1 %v6591_v1 }
  0xf5   : > { %6230 = vmatmul.mubr.bf16.gmra.mxu0 %v6592_v2  ;;  %6358 = vmatmul.mubr.bf16.gmra.mxu1 %v6593_v3  ;;  %v6639_v3 = vld [vmem:[%s7026_s20 + $0x3a0] sm:$0xff]  }
  0xf6   : > { %6233 = vmatprep.mubr.bf16.mxu0 %v6594_v4  ;;  %6361 = vmatprep.mubr.bf16.mxu1 %v6595_v5 }
  0xfd   : > { %6234 = vmatmul.mubr.bf16.gmra.mxu0 %v6596_v6  ;;  %6362 = vmatmul.mubr.bf16.gmra.mxu1 %v6597_v7 }
  0xfe   : > { %6237 = vmatprep.mubr.bf16.mxu0 %v6598_v8  ;;  %6365 = vmatprep.mubr.bf16.mxu1 %v6599_v9 }
 0x105   : > { %6238 = vmatmul.mubr.bf16.gmra.mxu0 %v6600_v10  ;;  %6366 = vmatmul.mubr.bf16.gmra.mxu1 %v6601_v11 }
 0x106   : > { %6241 = vmatprep.mubr.bf16.mxu0 %v6602_v12  ;;  %6369 = vmatprep.mubr.bf16.mxu1 %v6603_v13 }
 0x10d   : > { %6242 = vmatmul.mubr.bf16.gmra.mxu0 %v6604_v14  ;;  %6370 = vmatmul.mubr.bf16.gmra.mxu1 %v6605_v15 }
 0x10e   : > { %6245 = vmatprep.mubr.bf16.mxu0 %v6606_v16  ;;  %6373 = vmatprep.mubr.bf16.mxu1 %v6607_v17 }
 0x115   : > { %6246 = vmatmul.mubr.bf16.gmra.mxu0 %v6608_v18  ;;  %6374 = vmatmul.mubr.bf16.gmra.mxu1 %v6609_v19 }
 0x116   : > { %6249 = vmatprep.mubr.bf16.mxu0 %v6610_v20  ;;  %6377 = vmatprep.mubr.bf16.mxu1 %v6611_v21 }
 0x11d   : > { %6250 = vmatmul.mubr.bf16.gmra.mxu0 %v6612_v22  ;;  %6378 = vmatmul.mubr.bf16.gmra.mxu1 %v6613_v23 }
 0x11e   : > { %6253 = vmatprep.mubr.bf16.mxu0 %v6614_v24  ;;  %6381 = vmatprep.mubr.bf16.mxu1 %v6615_v25 }
 0x125   : > { %6254 = vmatmul.mubr.bf16.gmra.mxu0 %v6616_v26  ;;  %6382 = vmatmul.mubr.bf16.gmra.mxu1 %v6617_v27 }
 0x126   : > { %6257 = vmatprep.mubr.bf16.mxu0 %v6618_v28  ;;  %6385 = vmatprep.mubr.bf16.mxu1 %v6619_v29 }
 0x12d   : > { %6258 = vmatmul.mubr.bf16.gmra.mxu0 %v6620_v30  ;;  %6386 = vmatmul.mubr.bf16.gmra.mxu1 %v6621_v31 }
 0x12e   : > { %6261 = vmatprep.mubr.bf16.mxu0 %v6622_v32  ;;  %6389 = vmatprep.mubr.bf16.mxu1 %v6623_v33  ;;  %v6640_v32 = vld [vmem:[%s7026_s20 + $0x1a8] sm:$0xff]  }
 0x12f   : > { %v6641_v33 = vld [vmem:[%s7026_s20 + $0x3a8] sm:$0xff]  }
 0x135   : > { %6262 = vmatmul.mubr.bf16.gmra.mxu0 %v6624_v34  ;;  %6390 = vmatmul.mubr.bf16.gmra.mxu1 %v6625_v35 }
 0x136   : > { %6265 = vmatprep.mubr.bf16.mxu0 %v6626_v36  ;;  %6393 = vmatprep.mubr.bf16.mxu1 %v6627_v37  ;;  %v6642_v36 = vld [vmem:[%s7026_s20 + $0x1b0] sm:$0xff]  }
 0x13d   : > { %6266 = vmatmul.mubr.bf16.gmra.mxu0 %v6628_v38  ;;  %6394 = vmatmul.mubr.bf16.gmra.mxu1 %v6629_v39 }
 0x13e   : > { %6269 = vmatprep.mubr.bf16.mxu0 %v6630_v40  ;;  %6397 = vmatprep.mubr.bf16.mxu1 %v6631_v41 }
 0x145   : > { %v6175_v47 = vpop.f32.mrf.mxu0  ;;  %6270 = vmatmul.mubr.bf16.gmra.mxu0 %v6632_v42  ;;  %v6303_v48 = vpop.f32.mrf.mxu1  ;;  %6398 = vmatmul.mubr.bf16.gmra.mxu1 %v6633_v43  ;;  %v6643_v43 = vld [vmem:[%s7026_s20 + $0x3b0] sm:$0xff]  }
 0x146   : > { %v2413_v49 = vmul.f32 %v6175_v47, %v7142_v46  ;;  %v2541_v50 = vmul.f32 %v6303_v48, %v7142_v46  ;;  %6273 = vmatprep.mubr.bf16.mxu0 %v6634_v44  ;;  %6401 = vmatprep.mubr.bf16.mxu1 %v6635_v45 }
 0x147   : > { %v1381_v52 = vpop.f32.mrf.mxu0  ;;  %v1893_v53 = vpop.f32.mrf.mxu1 }
 0x148   : > { %v2411_v54 = vmul.f32 %v7142_v46, %v1381_v52  ;;  %v2539_v55 = vmul.f32 %v7142_v46, %v1893_v53  ;;  %v2676_v60 = vadd.f32 %v7146_v51, %v2413_v49  ;;  %v2804_v61 = vadd.f32 %v7146_v51, %v2541_v50 }
 0x149   : > { %v6176_v56 = vpop.f32.mrf.mxu0  ;;  %v6304_v57 = vpop.f32.mrf.mxu1 }
 0x14a   : > { %v2414_v63 = vmul.f32 %v6176_v56, %v7142_v46  ;;  %v2542_v0 = vmul.f32 %v6304_v57, %v7142_v46  ;;  %v2674_v4 = vadd.f32 %v7146_v51, %v2411_v54  ;;  %v2802_v5 = vadd.f32 %v7146_v51, %v2539_v55 }
 0x14b   : > { %v1384_v1 = vpop.f32.mrf.mxu0  ;;  %v1896_v2 = vpop.f32.mrf.mxu1  ;;  %v2932_v12 = vmax.f32 %v2676_v60, 0.0  ;;  %v3060_v13 = vmax.f32 %v2804_v61, 0.0 }
 0x14c   : > { %v2412_v6 = vmul.f32 %v7142_v46, %v1384_v1  ;;  %v2540_v7 = vmul.f32 %v7142_v46, %v1896_v2  ;;  %v2677_v8 = vadd.f32 %v7146_v51, %v2414_v63  ;;  %v2805_v9 = vadd.f32 %v7146_v51, %v2542_v0 }
 0x14d   : > { %v6179_v10 = vpop.f32.mrf.mxu0  ;;  %6274 = vmatmul.mubr.bf16.gmra.mxu0 %v6636_v58  ;;  %v6307_v11 = vpop.f32.mrf.mxu1  ;;  %6402 = vmatmul.mubr.bf16.gmra.mxu1 %v6637_v59  ;;  %v2930_v22 = vmax.f32 %v2674_v4, 0.0  ;;  %v3058_v23 = vmax.f32 %v2802_v5, 0.0 }
 0x14e   : > { %v2675_v14 = vadd.f32 %v7146_v51, %v2412_v6  ;;  %v2803_v15 = vadd.f32 %v7146_v51, %v2540_v7  ;;  %6277 = vmatprep.mubr.bf16.mxu0 %v6638_v62  ;;  %v2933_v16 = vmax.f32 %v2677_v8, 0.0  ;;  %v3061_v17 = vmax.f32 %v2805_v9, 0.0  ;;  %6405 = vmatprep.mubr.bf16.mxu1 %v6639_v3 }
 0x14f   : > { %v2417_v18 = vmul.f32 %v6179_v10, %v7142_v46  ;;  %v2545_v19 = vmul.f32 %v6307_v11, %v7142_v46  ;;  %v1397_v20 = vpop.f32.mrf.mxu0  ;;  %v1909_v21 = vpop.f32.mrf.mxu1  ;;  %v6644_v10 = vld [vmem:[%s7026_s20 + $0x1b8] sm:$0xff]  }
 0x150   : > { %v2931_v24 = vmax.f32 %v2675_v14, 0.0  ;;  %v3059_v25 = vmax.f32 %v2803_v15, 0.0  ;;  %v5262_v26 = vpack.c.bf16 %v2933_v16, %v2932_v12  ;;  %v5582_v27 = vpack.c.bf16 %v3061_v17, %v3060_v13  ;;  %v6645_v11 = vld [vmem:[%s7026_s20 + $0x3b8] sm:$0xff]   ;;  %v6646_v16 = vld [vmem:[%s7026_s20 + $0x1c0] sm:$0xff]  }
 0x151   : > { %v2415_v28 = vmul.f32 %v7142_v46, %v1397_v20  ;;  %v2543_v29 = vmul.f32 %v7142_v46, %v1909_v21  ;;  %v6180_v30 = vpop.f32.mrf.mxu0  ;;  %v6308_v31 = vpop.f32.mrf.mxu1  ;;  %v2680_v37 = vadd.f32 %v7146_v51, %v2417_v18  ;;  %v2808_v38 = vadd.f32 %v7146_v51, %v2545_v19  ;;  %v6647_v21 = vld [vmem:[%s7026_s20 + $0x3c0] sm:$0xff]  }
 0x152   : > { %v5257_v34 = vpack.c.bf16 %v2931_v24, %v2930_v22  ;;  %v5577_v35 = vpack.c.bf16 %v3059_v25, %v3058_v23  ;;  %5894 = vst [vmem:[%s7175_s21 + $0x8] sm:$0xff] %v5262_v26   ;;  %5958 = vst [vmem:[%s7175_s21 + $0x208] sm:$0xff] %v5582_v27   ;;  %v2418_v39 = vmul.f32 %v6180_v30, %v7142_v46 }
 0x153   : > { %v2546_v40 = vmul.f32 %v6308_v31, %v7142_v46  ;;  %v1400_v41 = vpop.f32.mrf.mxu0  ;;  %v1912_v42 = vpop.f32.mrf.mxu1  ;;  %v2678_v44 = vadd.f32 %v7146_v51, %v2415_v28  ;;  %v2806_v45 = vadd.f32 %v7146_v51, %v2543_v29  ;;  %v2936_v58 = vmax.f32 %v2680_v37, 0.0 }
 0x154   : > { %5258 = vst [vmem:[%s7175_s21] sm:$0xff] %v5257_v34   ;;  %5957 = vst [vmem:[%s7175_s21 + $0x200] sm:$0xff] %v5577_v35   ;;  %v2416_v47 = vmul.f32 %v7142_v46, %v1400_v41  ;;  %v2544_v48 = vmul.f32 %v7142_v46, %v1912_v42  ;;  %v2681_v49 = vadd.f32 %v7146_v51, %v2418_v39  ;;  %v3064_v59 = vmax.f32 %v2808_v38, 0.0 }
 0x155   : > { %v2809_v50 = vadd.f32 %v7146_v51, %v2546_v40  ;;  %v6183_v52 = vpop.f32.mrf.mxu0  ;;  %6278 = vmatmul.mubr.bf16.gmra.mxu0 %v6640_v32  ;;  %v6311_v53 = vpop.f32.mrf.mxu1  ;;  %6406 = vmatmul.mubr.bf16.gmra.mxu1 %v6641_v33  ;;  %v2934_v0 = vmax.f32 %v2678_v44, 0.0  ;;  %v3062_v1 = vmax.f32 %v2806_v45, 0.0 }
 0x156   : > { %v2679_v54 = vadd.f32 %v7146_v51, %v2416_v47  ;;  %v2807_v55 = vadd.f32 %v7146_v51, %v2544_v48  ;;  %v2421_v56 = vmul.f32 %v6183_v52, %v7142_v46  ;;  %v2549_v57 = vmul.f32 %v6311_v53, %v7142_v46  ;;  %6281 = vmatprep.mubr.bf16.mxu0 %v6642_v36  ;;  %v6648_v52 = vld [vmem:[%s7026_s20 + $0x1c8] sm:$0xff]  }
 0x157   : > { %v2937_v60 = vmax.f32 %v2681_v49, 0.0  ;;  %v3065_v61 = vmax.f32 %v2809_v50, 0.0  ;;  %v1413_v62 = vpop.f32.mrf.mxu0  ;;  %v1925_v63 = vpop.f32.mrf.mxu1  ;;  %6409 = vmatprep.mubr.bf16.mxu1 %v6643_v43  ;;  %v6649_v53 = vld [vmem:[%s7026_s20 + $0x3c8] sm:$0xff]  }
 0x158   : > { %v2935_v2 = vmax.f32 %v2679_v54, 0.0  ;;  %v3063_v3 = vmax.f32 %v2807_v55, 0.0  ;;  %v2419_v6 = vmul.f32 %v7142_v46, %v1413_v62  ;;  %v2547_v7 = vmul.f32 %v7142_v46, %v1925_v63  ;;  %v6651_v63 = vld [vmem:[%s7026_s20 + $0x3d0] sm:$0xff]  }
 0x159   : > { %v5272_v4 = vpack.c.bf16 %v2937_v60, %v2936_v58  ;;  %v5592_v5 = vpack.c.bf16 %v3065_v61, %v3064_v59  ;;  %v6184_v8 = vpop.f32.mrf.mxu0  ;;  %v6312_v9 = vpop.f32.mrf.mxu1  ;;  %v2684_v14 = vadd.f32 %v7146_v51, %v2421_v56  ;;  %v2812_v15 = vadd.f32 %v7146_v51, %v2549_v57  ;;  %v6650_v56 = vld [vmem:[%s7026_s20 + $0x1d0] sm:$0xff]  }
 0x15a   : > { %v5267_v12 = vpack.c.bf16 %v2935_v2, %v2934_v0  ;;  %v5587_v13 = vpack.c.bf16 %v3063_v3, %v3062_v1  ;;  %v2422_v17 = vmul.f32 %v6184_v8, %v7142_v46  ;;  %v2550_v18 = vmul.f32 %v6312_v9, %v7142_v46 }
 0x15b   : > { %5896 = vst [vmem:[%s7175_s21 + $0x18] sm:$0xff] %v5272_v4   ;;  %5960 = vst [vmem:[%s7175_s21 + $0x218] sm:$0xff] %v5592_v5   ;;  %v1416_v19 = vpop.f32.mrf.mxu0  ;;  %v1928_v20 = vpop.f32.mrf.mxu1  ;;  %v2682_v22 = vadd.f32 %v7146_v51, %v2419_v6  ;;  %v2810_v23 = vadd.f32 %v7146_v51, %v2547_v7  ;;  %v2940_v30 = vmax.f32 %v2684_v14, 0.0  ;;  %v3068_v31 = vmax.f32 %v2812_v15, 0.0 }
 0x15c   : > { %5895 = vst [vmem:[%s7175_s21 + $0x10] sm:$0xff] %v5267_v12   ;;  %5959 = vst [vmem:[%s7175_s21 + $0x210] sm:$0xff] %v5587_v13   ;;  %v2420_v24 = vmul.f32 %v7142_v46, %v1416_v19  ;;  %v2548_v25 = vmul.f32 %v7142_v46, %v1928_v20  ;;  %v2685_v26 = vadd.f32 %v7146_v51, %v2422_v17 }
 0x15d   : > { %v2813_v27 = vadd.f32 %v7146_v51, %v2550_v18  ;;  %v6187_v28 = vpop.f32.mrf.mxu0  ;;  %6282 = vmatmul.mubr.bf16.gmra.mxu0 %v6644_v10  ;;  %v6315_v29 = vpop.f32.mrf.mxu1  ;;  %6410 = vmatmul.mubr.bf16.gmra.mxu1 %v6645_v11  ;;  %v2938_v40 = vmax.f32 %v2682_v22, 0.0  ;;  %v3066_v41 = vmax.f32 %v2810_v23, 0.0 }
 0x15e   : > { %v2683_v32 = vadd.f32 %v7146_v51, %v2420_v24  ;;  %v2811_v33 = vadd.f32 %v7146_v51, %v2548_v25  ;;  %6285 = vmatprep.mubr.bf16.mxu0 %v6646_v16  ;;  %v2941_v34 = vmax.f32 %v2685_v26, 0.0  ;;  %v2425_v36 = vmul.f32 %v6187_v28, %v7142_v46  ;;  %6413 = vmatprep.mubr.bf16.mxu1 %v6647_v21  ;;  %v6652_v28 = vld [vmem:[%s7026_s20 + $0x1d8] sm:$0xff]  }
 0x15f   : > { %v3069_v35 = vmax.f32 %v2813_v27, 0.0  ;;  %v2553_v37 = vmul.f32 %v6315_v29, %v7142_v46  ;;  %v1429_v38 = vpop.f32.mrf.mxu0  ;;  %v1941_v39 = vpop.f32.mrf.mxu1  ;;  %v6653_v29 = vld [vmem:[%s7026_s20 + $0x3d8] sm:$0xff]  }
 0x160   : > { %v2939_v42 = vmax.f32 %v2683_v32, 0.0  ;;  %v3067_v43 = vmax.f32 %v2811_v33, 0.0  ;;  %v5282_v44 = vpack.c.bf16 %v2941_v34, %v2940_v30  ;;  %v2423_v47 = vmul.f32 %v7142_v46, %v1429_v38  ;;  %v6654_v34 = vld [vmem:[%s7026_s20 + $0x1e0] sm:$0xff]  }
 0x161   : > { %v5602_v45 = vpack.c.bf16 %v3069_v35, %v3068_v31  ;;  %v2551_v48 = vmul.f32 %v7142_v46, %v1941_v39  ;;  %v6188_v49 = vpop.f32.mrf.mxu0  ;;  %v6316_v50 = vpop.f32.mrf.mxu1  ;;  %v2688_v57 = vadd.f32 %v7146_v51, %v2425_v36  ;;  %v2816_v58 = vadd.f32 %v7146_v51, %v2553_v37  ;;  %v6655_v39 = vld [vmem:[%s7026_s20 + $0x3e0] sm:$0xff]  }
 0x162   : > { %v5277_v54 = vpack.c.bf16 %v2939_v42, %v2938_v40  ;;  %v5597_v55 = vpack.c.bf16 %v3067_v43, %v3066_v41  ;;  %5898 = vst [vmem:[%s7175_s21 + $0x28] sm:$0xff] %v5282_v44   ;;  %v2426_v59 = vmul.f32 %v6188_v49, %v7142_v46  ;;  %v2554_v60 = vmul.f32 %v6316_v50, %v7142_v46 }
 0x163   : > { %5962 = vst [vmem:[%s7175_s21 + $0x228] sm:$0xff] %v5602_v45   ;;  %v1432_v61 = vpop.f32.mrf.mxu0  ;;  %v1944_v62 = vpop.f32.mrf.mxu1  ;;  %v2686_v0 = vadd.f32 %v7146_v51, %v2423_v47  ;;  %v2814_v1 = vadd.f32 %v7146_v51, %v2551_v48  ;;  %v2944_v12 = vmax.f32 %v2688_v57, 0.0  ;;  %v3072_v13 = vmax.f32 %v2816_v58, 0.0 }
 0x164   : > { %5897 = vst [vmem:[%s7175_s21 + $0x20] sm:$0xff] %v5277_v54   ;;  %5961 = vst [vmem:[%s7175_s21 + $0x220] sm:$0xff] %v5597_v55   ;;  %v2424_v2 = vmul.f32 %v7142_v46, %v1432_v61  ;;  %v2552_v3 = vmul.f32 %v7142_v46, %v1944_v62  ;;  %v2689_v4 = vadd.f32 %v7146_v51, %v2426_v59 }
 0x165   : > { %v2817_v5 = vadd.f32 %v7146_v51, %v2554_v60  ;;  %v6191_v6 = vpop.f32.mrf.mxu0  ;;  %6286 = vmatmul.mubr.bf16.gmra.mxu0 %v6648_v52  ;;  %v6319_v7 = vpop.f32.mrf.mxu1  ;;  %6414 = vmatmul.mubr.bf16.gmra.mxu1 %v6649_v53  ;;  %v2942_v18 = vmax.f32 %v2686_v0, 0.0  ;;  %v3070_v19 = vmax.f32 %v2814_v1, 0.0 }
 0x166   : > { %v2687_v8 = vadd.f32 %v7146_v51, %v2424_v2  ;;  %v2815_v9 = vadd.f32 %v7146_v51, %v2552_v3  ;;  %v2429_v10 = vmul.f32 %v6191_v6, %v7142_v46  ;;  %v2557_v11 = vmul.f32 %v6319_v7, %v7142_v46  ;;  %6289 = vmatprep.mubr.bf16.mxu0 %v6650_v56  ;;  %v6656_v6 = vld [vmem:[%s7026_s20 + $0x1e8] sm:$0xff]  }
 0x167   : > { %v2945_v14 = vmax.f32 %v2689_v4, 0.0  ;;  %v3073_v15 = vmax.f32 %v2817_v5, 0.0  ;;  %v1445_v16 = vpop.f32.mrf.mxu0  ;;  %v1957_v17 = vpop.f32.mrf.mxu1  ;;  %6417 = vmatprep.mubr.bf16.mxu1 %v6651_v63  ;;  %v6657_v7 = vld [vmem:[%s7026_s20 + $0x3e8] sm:$0xff]  }
 0x168   : > { %v2943_v20 = vmax.f32 %v2687_v8, 0.0  ;;  %v3071_v21 = vmax.f32 %v2815_v9, 0.0  ;;  %v2427_v24 = vmul.f32 %v7142_v46, %v1445_v16  ;;  %v2555_v25 = vmul.f32 %v7142_v46, %v1957_v17  ;;  %v6659_v17 = vld [vmem:[%s7026_s20 + $0x3f0] sm:$0xff]  }
 0x169   : > { %v5292_v22 = vpack.c.bf16 %v2945_v14, %v2944_v12  ;;  %v5612_v23 = vpack.c.bf16 %v3073_v15, %v3072_v13  ;;  %v6192_v26 = vpop.f32.mrf.mxu0  ;;  %v6320_v27 = vpop.f32.mrf.mxu1  ;;  %v2692_v32 = vadd.f32 %v7146_v51, %v2429_v10  ;;  %v2820_v33 = vadd.f32 %v7146_v51, %v2557_v11  ;;  %v6658_v10 = vld [vmem:[%s7026_s20 + $0x1f0] sm:$0xff]  }
 0x16a   : > { %v5287_v30 = vpack.c.bf16 %v2943_v20, %v2942_v18  ;;  %v5607_v31 = vpack.c.bf16 %v3071_v21, %v3070_v19  ;;  %v2430_v35 = vmul.f32 %v6192_v26, %v7142_v46  ;;  %v2558_v36 = vmul.f32 %v6320_v27, %v7142_v46 }
 0x16b   : > { %5900 = vst [vmem:[%s7175_s21 + $0x38] sm:$0xff] %v5292_v22   ;;  %5964 = vst [vmem:[%s7175_s21 + $0x238] sm:$0xff] %v5612_v23   ;;  %v1448_v37 = vpop.f32.mrf.mxu0  ;;  %v1960_v38 = vpop.f32.mrf.mxu1  ;;  %v2690_v40 = vadd.f32 %v7146_v51, %v2427_v24  ;;  %v2818_v41 = vadd.f32 %v7146_v51, %v2555_v25  ;;  %v2948_v49 = vmax.f32 %v2692_v32, 0.0  ;;  %v3076_v50 = vmax.f32 %v2820_v33, 0.0 }
 0x16c   : > { %5899 = vst [vmem:[%s7175_s21 + $0x30] sm:$0xff] %v5287_v30   ;;  %5963 = vst [vmem:[%s7175_s21 + $0x230] sm:$0xff] %v5607_v31   ;;  %v2428_v42 = vmul.f32 %v7142_v46, %v1448_v37  ;;  %v2556_v43 = vmul.f32 %v7142_v46, %v1960_v38  ;;  %v2693_v44 = vadd.f32 %v7146_v51, %v2430_v35 }
 0x16d   : > { %v2821_v45 = vadd.f32 %v7146_v51, %v2558_v36  ;;  %v6195_v47 = vpop.f32.mrf.mxu0  ;;  %6290 = vmatmul.mubr.bf16.gmra.mxu0 %v6652_v28  ;;  %v6323_v48 = vpop.f32.mrf.mxu1  ;;  %6418 = vmatmul.mubr.bf16.gmra.mxu1 %v6653_v29  ;;  %v2946_v60 = vmax.f32 %v2690_v40, 0.0  ;;  %v3074_v61 = vmax.f32 %v2818_v41, 0.0 }
 0x16e   : > { %v2691_v52 = vadd.f32 %v7146_v51, %v2428_v42  ;;  %v2819_v53 = vadd.f32 %v7146_v51, %v2556_v43  ;;  %6293 = vmatprep.mubr.bf16.mxu0 %v6654_v34  ;;  %v2949_v54 = vmax.f32 %v2693_v44, 0.0  ;;  %v2433_v56 = vmul.f32 %v6195_v47, %v7142_v46  ;;  %6421 = vmatprep.mubr.bf16.mxu1 %v6655_v39  ;;  %v6660_v47 = vld [vmem:[%s7026_s20 + $0x1f8] sm:$0xff]  }
 0x16f   : > { %v3077_v55 = vmax.f32 %v2821_v45, 0.0  ;;  %v2561_v57 = vmul.f32 %v6323_v48, %v7142_v46  ;;  %v1461_v58 = vpop.f32.mrf.mxu0  ;;  %v1973_v59 = vpop.f32.mrf.mxu1  ;;  %v6661_v48 = vld [vmem:[%s7026_s20 + $0x3f8] sm:$0xff]  }
 0x170   : > { %v2947_v62 = vmax.f32 %v2691_v52, 0.0  ;;  %v3075_v63 = vmax.f32 %v2819_v53, 0.0  ;;  %v5302_v0 = vpack.c.bf16 %v2949_v54, %v2948_v49  ;;  %v2431_v2 = vmul.f32 %v7142_v46, %v1461_v58 }
 0x171   : > { %v5622_v1 = vpack.c.bf16 %v3077_v55, %v3076_v50  ;;  %v2559_v3 = vmul.f32 %v7142_v46, %v1973_v59  ;;  %v6196_v4 = vpop.f32.mrf.mxu0  ;;  %v6324_v5 = vpop.f32.mrf.mxu1  ;;  %v2696_v11 = vadd.f32 %v7146_v51, %v2433_v56  ;;  %v2824_v12 = vadd.f32 %v7146_v51, %v2561_v57 }
 0x172   : > { %v5297_v8 = vpack.c.bf16 %v2947_v62, %v2946_v60  ;;  %v5617_v9 = vpack.c.bf16 %v3075_v63, %v3074_v61  ;;  %5902 = vst [vmem:[%s7175_s21 + $0x48] sm:$0xff] %v5302_v0   ;;  %v2434_v13 = vmul.f32 %v6196_v4, %v7142_v46  ;;  %v2562_v14 = vmul.f32 %v6324_v5, %v7142_v46 }
 0x173   : > { %5966 = vst [vmem:[%s7175_s21 + $0x248] sm:$0xff] %v5622_v1   ;;  %v1464_v15 = vpop.f32.mrf.mxu0  ;;  %v1976_v16 = vpop.f32.mrf.mxu1  ;;  %v2694_v18 = vadd.f32 %v7146_v51, %v2431_v2  ;;  %v2822_v19 = vadd.f32 %v7146_v51, %v2559_v3  ;;  %v2952_v30 = vmax.f32 %v2696_v11, 0.0  ;;  %v3080_v31 = vmax.f32 %v2824_v12, 0.0 }
 0x174   : > { %5901 = vst [vmem:[%s7175_s21 + $0x40] sm:$0xff] %v5297_v8   ;;  %5965 = vst [vmem:[%s7175_s21 + $0x240] sm:$0xff] %v5617_v9   ;;  %v2432_v20 = vmul.f32 %v7142_v46, %v1464_v15  ;;  %v2560_v21 = vmul.f32 %v7142_v46, %v1976_v16  ;;  %v2697_v22 = vadd.f32 %v7146_v51, %v2434_v13 }
 0x175   : > { %v2825_v23 = vadd.f32 %v7146_v51, %v2562_v14  ;;  %v6199_v24 = vpop.f32.mrf.mxu0  ;;  %6294 = vmatmul.mubr.bf16.gmra.mxu0 %v6656_v6  ;;  %v6327_v25 = vpop.f32.mrf.mxu1  ;;  %6422 = vmatmul.mubr.bf16.gmra.mxu1 %v6657_v7  ;;  %v2950_v36 = vmax.f32 %v2694_v18, 0.0  ;;  %v3078_v37 = vmax.f32 %v2822_v19, 0.0 }
 0x176   : > { %v2695_v26 = vadd.f32 %v7146_v51, %v2432_v20  ;;  %v2823_v27 = vadd.f32 %v7146_v51, %v2560_v21  ;;  %v2437_v28 = vmul.f32 %v6199_v24, %v7142_v46  ;;  %v2565_v29 = vmul.f32 %v6327_v25, %v7142_v46  ;;  %6297 = vmatprep.mubr.bf16.mxu0 %v6658_v10 }
 0x177   : > { %v2953_v32 = vmax.f32 %v2697_v22, 0.0  ;;  %v3081_v33 = vmax.f32 %v2825_v23, 0.0  ;;  %v1477_v34 = vpop.f32.mrf.mxu0  ;;  %v1989_v35 = vpop.f32.mrf.mxu1  ;;  %6425 = vmatprep.mubr.bf16.mxu1 %v6659_v17 }
 0x178   : > { %v2951_v38 = vmax.f32 %v2695_v26, 0.0  ;;  %v3079_v39 = vmax.f32 %v2823_v27, 0.0  ;;  %v2435_v42 = vmul.f32 %v7142_v46, %v1477_v34  ;;  %v2563_v43 = vmul.f32 %v7142_v46, %v1989_v35 }
 0x179   : > { %v5312_v40 = vpack.c.bf16 %v2953_v32, %v2952_v30  ;;  %v5632_v41 = vpack.c.bf16 %v3081_v33, %v3080_v31  ;;  %v6200_v44 = vpop.f32.mrf.mxu0  ;;  %v6328_v45 = vpop.f32.mrf.mxu1  ;;  %v2700_v52 = vadd.f32 %v7146_v51, %v2437_v28  ;;  %v2828_v53 = vadd.f32 %v7146_v51, %v2565_v29 }
 0x17a   : > { %v5307_v49 = vpack.c.bf16 %v2951_v38, %v2950_v36  ;;  %v5627_v50 = vpack.c.bf16 %v3079_v39, %v3078_v37  ;;  %v2438_v54 = vmul.f32 %v6200_v44, %v7142_v46  ;;  %v2566_v55 = vmul.f32 %v6328_v45, %v7142_v46 }
 0x17b   : > { %5904 = vst [vmem:[%s7175_s21 + $0x58] sm:$0xff] %v5312_v40   ;;  %5968 = vst [vmem:[%s7175_s21 + $0x258] sm:$0xff] %v5632_v41   ;;  %v1480_v56 = vpop.f32.mrf.mxu0  ;;  %v1992_v57 = vpop.f32.mrf.mxu1  ;;  %v2698_v58 = vadd.f32 %v7146_v51, %v2435_v42  ;;  %v2826_v59 = vadd.f32 %v7146_v51, %v2563_v43  ;;  %v2956_v2 = vmax.f32 %v2700_v52, 0.0  ;;  %v3084_v3 = vmax.f32 %v2828_v53, 0.0 }
 0x17c   : > { %5903 = vst [vmem:[%s7175_s21 + $0x50] sm:$0xff] %v5307_v49   ;;  %5967 = vst [vmem:[%s7175_s21 + $0x250] sm:$0xff] %v5627_v50   ;;  %v2436_v60 = vmul.f32 %v7142_v46, %v1480_v56  ;;  %v2564_v61 = vmul.f32 %v7142_v46, %v1992_v57  ;;  %v2701_v62 = vadd.f32 %v7146_v51, %v2438_v54 }
 0x17d   : > { %v2829_v63 = vadd.f32 %v7146_v51, %v2566_v55  ;;  %v6203_v0 = vpop.f32.mrf.mxu0  ;;  %6298 = vmatmul.mubr.bf16.gmra.mxu0 %v6660_v47  ;;  %v6331_v1 = vpop.f32.mrf.mxu1  ;;  %6426 = vmatmul.mubr.bf16.gmra.mxu1 %v6661_v48  ;;  %v2954_v12 = vmax.f32 %v2698_v58, 0.0  ;;  %v3082_v13 = vmax.f32 %v2826_v59, 0.0 }
 0x17e   : > { %v2699_v4 = vadd.f32 %v7146_v51, %v2436_v60  ;;  %v2827_v5 = vadd.f32 %v7146_v51, %v2564_v61  ;;  %v2957_v6 = vmax.f32 %v2701_v62, 0.0  ;;  %v2441_v8 = vmul.f32 %v6203_v0, %v7142_v46 }
 0x17f   : > { %v3085_v7 = vmax.f32 %v2829_v63, 0.0  ;;  %v2569_v9 = vmul.f32 %v6331_v1, %v7142_v46  ;;  %v1493_v10 = vpop.f32.mrf.mxu0  ;;  %v2005_v11 = vpop.f32.mrf.mxu1 }
 0x180   : > { %v2955_v14 = vmax.f32 %v2699_v4, 0.0  ;;  %v3083_v15 = vmax.f32 %v2827_v5, 0.0  ;;  %v5322_v16 = vpack.c.bf16 %v2957_v6, %v2956_v2  ;;  %v2439_v18 = vmul.f32 %v7142_v46, %v1493_v10 }
 0x181   : > { %v5642_v17 = vpack.c.bf16 %v3085_v7, %v3084_v3  ;;  %v2567_v19 = vmul.f32 %v7142_v46, %v2005_v11  ;;  %v6204_v20 = vpop.f32.mrf.mxu0  ;;  %v6332_v21 = vpop.f32.mrf.mxu1  ;;  %v2704_v24 = vadd.f32 %v7146_v51, %v2441_v8  ;;  %v2832_v25 = vadd.f32 %v7146_v51, %v2569_v9 }
 0x182   : > { %v5317_v22 = vpack.c.bf16 %v2955_v14, %v2954_v12  ;;  %v5637_v23 = vpack.c.bf16 %v3083_v15, %v3082_v13  ;;  %5906 = vst [vmem:[%s7175_s21 + $0x68] sm:$0xff] %v5322_v16   ;;  %v2442_v26 = vmul.f32 %v6204_v20, %v7142_v46  ;;  %v2570_v27 = vmul.f32 %v6332_v21, %v7142_v46 }
 0x183   : > { %5970 = vst [vmem:[%s7175_s21 + $0x268] sm:$0xff] %v5642_v17   ;;  %v1496_v28 = vpop.f32.mrf.mxu0  ;;  %v2008_v29 = vpop.f32.mrf.mxu1  ;;  %v2702_v30 = vadd.f32 %v7146_v51, %v2439_v18  ;;  %v2830_v31 = vadd.f32 %v7146_v51, %v2567_v19  ;;  %v2960_v42 = vmax.f32 %v2704_v24, 0.0  ;;  %v3088_v43 = vmax.f32 %v2832_v25, 0.0 }
 0x184   : > { %5905 = vst [vmem:[%s7175_s21 + $0x60] sm:$0xff] %v5317_v22   ;;  %5969 = vst [vmem:[%s7175_s21 + $0x260] sm:$0xff] %v5637_v23   ;;  %v2440_v32 = vmul.f32 %v7142_v46, %v1496_v28  ;;  %v2568_v33 = vmul.f32 %v7142_v46, %v2008_v29  ;;  %v2705_v34 = vadd.f32 %v7146_v51, %v2442_v26 }
 0x185   : > { %v2833_v35 = vadd.f32 %v7146_v51, %v2570_v27  ;;  %v6207_v36 = vpop.f32.mrf.mxu0  ;;  %v6335_v37 = vpop.f32.mrf.mxu1  ;;  %v2958_v49 = vmax.f32 %v2702_v30, 0.0  ;;  %v3086_v50 = vmax.f32 %v2830_v31, 0.0 }
 0x186   : > { %v2703_v38 = vadd.f32 %v7146_v51, %v2440_v32  ;;  %v2831_v39 = vadd.f32 %v7146_v51, %v2568_v33  ;;  %v2445_v40 = vmul.f32 %v6207_v36, %v7142_v46  ;;  %v2573_v41 = vmul.f32 %v6335_v37, %v7142_v46 }
 0x187   : > { %v2961_v44 = vmax.f32 %v2705_v34, 0.0  ;;  %v3089_v45 = vmax.f32 %v2833_v35, 0.0  ;;  %v1509_v47 = vpop.f32.mrf.mxu0  ;;  %v2021_v48 = vpop.f32.mrf.mxu1 }
 0x188   : > { %v2959_v52 = vmax.f32 %v2703_v38, 0.0  ;;  %v3087_v53 = vmax.f32 %v2831_v39, 0.0  ;;  %v2443_v56 = vmul.f32 %v7142_v46, %v1509_v47  ;;  %v2571_v57 = vmul.f32 %v7142_v46, %v2021_v48 }
 0x189   : > { %v5332_v54 = vpack.c.bf16 %v2961_v44, %v2960_v42  ;;  %v5652_v55 = vpack.c.bf16 %v3089_v45, %v3088_v43  ;;  %v6208_v58 = vpop.f32.mrf.mxu0  ;;  %v6336_v59 = vpop.f32.mrf.mxu1  ;;  %v2708_v62 = vadd.f32 %v7146_v51, %v2445_v40  ;;  %v2836_v63 = vadd.f32 %v7146_v51, %v2573_v41 }
 0x18a   : > { %v5327_v60 = vpack.c.bf16 %v2959_v52, %v2958_v49  ;;  %v5647_v61 = vpack.c.bf16 %v3087_v53, %v3086_v50  ;;  %v2446_v0 = vmul.f32 %v6208_v58, %v7142_v46  ;;  %v2574_v1 = vmul.f32 %v6336_v59, %v7142_v46 }
 0x18b   : > { %5908 = vst [vmem:[%s7175_s21 + $0x78] sm:$0xff] %v5332_v54   ;;  %5972 = vst [vmem:[%s7175_s21 + $0x278] sm:$0xff] %v5652_v55   ;;  %v1512_v2 = vpop.f32.mrf.mxu0  ;;  %v2024_v3 = vpop.f32.mrf.mxu1  ;;  %v2706_v4 = vadd.f32 %v7146_v51, %v2443_v56  ;;  %v2834_v5 = vadd.f32 %v7146_v51, %v2571_v57  ;;  %v2964_v12 = vmax.f32 %v2708_v62, 0.0  ;;  %v3092_v13 = vmax.f32 %v2836_v63, 0.0 }
 0x18c   : > { %5907 = vst [vmem:[%s7175_s21 + $0x70] sm:$0xff] %v5327_v60   ;;  %5971 = vst [vmem:[%s7175_s21 + $0x270] sm:$0xff] %v5647_v61   ;;  %v2444_v6 = vmul.f32 %v7142_v46, %v1512_v2  ;;  %v2572_v7 = vmul.f32 %v7142_v46, %v2024_v3  ;;  %v2709_v8 = vadd.f32 %v7146_v51, %v2446_v0 }
 0x18d   : > { %v2837_v9 = vadd.f32 %v7146_v51, %v2574_v1  ;;  %v6211_v10 = vpop.f32.mrf.mxu0  ;;  %v6339_v11 = vpop.f32.mrf.mxu1  ;;  %v2962_v22 = vmax.f32 %v2706_v4, 0.0  ;;  %v3090_v23 = vmax.f32 %v2834_v5, 0.0 }
 0x18e   : > { %v2707_v14 = vadd.f32 %v7146_v51, %v2444_v6  ;;  %v2835_v15 = vadd.f32 %v7146_v51, %v2572_v7  ;;  %v2965_v16 = vmax.f32 %v2709_v8, 0.0  ;;  %v2449_v18 = vmul.f32 %v6211_v10, %v7142_v46 }
 0x18f   : > { %v3093_v17 = vmax.f32 %v2837_v9, 0.0  ;;  %v2577_v19 = vmul.f32 %v6339_v11, %v7142_v46  ;;  %v1525_v20 = vpop.f32.mrf.mxu0  ;;  %v2037_v21 = vpop.f32.mrf.mxu1 }
 0x190   : > { %v2963_v24 = vmax.f32 %v2707_v14, 0.0  ;;  %v3091_v25 = vmax.f32 %v2835_v15, 0.0  ;;  %v5342_v26 = vpack.c.bf16 %v2965_v16, %v2964_v12  ;;  %v2447_v28 = vmul.f32 %v7142_v46, %v1525_v20 }
 0x191   : > { %v5662_v27 = vpack.c.bf16 %v3093_v17, %v3092_v13  ;;  %v2575_v29 = vmul.f32 %v7142_v46, %v2037_v21  ;;  %v6212_v30 = vpop.f32.mrf.mxu0  ;;  %v6340_v31 = vpop.f32.mrf.mxu1  ;;  %v2712_v34 = vadd.f32 %v7146_v51, %v2449_v18  ;;  %v2840_v35 = vadd.f32 %v7146_v51, %v2577_v19 }
 0x192   : > { %v5337_v32 = vpack.c.bf16 %v2963_v24, %v2962_v22  ;;  %v5657_v33 = vpack.c.bf16 %v3091_v25, %v3090_v23  ;;  %5910 = vst [vmem:[%s7175_s21 + $0x88] sm:$0xff] %v5342_v26   ;;  %v2450_v36 = vmul.f32 %v6212_v30, %v7142_v46  ;;  %v2578_v37 = vmul.f32 %v6340_v31, %v7142_v46 }
 0x193   : > { %5974 = vst [vmem:[%s7175_s21 + $0x288] sm:$0xff] %v5662_v27   ;;  %v1528_v38 = vpop.f32.mrf.mxu0  ;;  %v2040_v39 = vpop.f32.mrf.mxu1  ;;  %v2710_v40 = vadd.f32 %v7146_v51, %v2447_v28  ;;  %v2838_v41 = vadd.f32 %v7146_v51, %v2575_v29  ;;  %v2968_v54 = vmax.f32 %v2712_v34, 0.0  ;;  %v3096_v55 = vmax.f32 %v2840_v35, 0.0 }
 0x194   : > { %5909 = vst [vmem:[%s7175_s21 + $0x80] sm:$0xff] %v5337_v32   ;;  %5973 = vst [vmem:[%s7175_s21 + $0x280] sm:$0xff] %v5657_v33   ;;  %v2448_v42 = vmul.f32 %v7142_v46, %v1528_v38  ;;  %v2576_v43 = vmul.f32 %v7142_v46, %v2040_v39  ;;  %v2713_v44 = vadd.f32 %v7146_v51, %v2450_v36 }
 0x195   : > { %v2841_v45 = vadd.f32 %v7146_v51, %v2578_v37  ;;  %v6215_v47 = vpop.f32.mrf.mxu0  ;;  %v6343_v48 = vpop.f32.mrf.mxu1  ;;  %v2966_v60 = vmax.f32 %v2710_v40, 0.0  ;;  %v3094_v61 = vmax.f32 %v2838_v41, 0.0 }
 0x196   : > { %v2711_v49 = vadd.f32 %v7146_v51, %v2448_v42  ;;  %v2839_v50 = vadd.f32 %v7146_v51, %v2576_v43  ;;  %v2453_v52 = vmul.f32 %v6215_v47, %v7142_v46  ;;  %v2581_v53 = vmul.f32 %v6343_v48, %v7142_v46 }
 0x197   : > { %v2969_v56 = vmax.f32 %v2713_v44, 0.0  ;;  %v3097_v57 = vmax.f32 %v2841_v45, 0.0  ;;  %v1541_v58 = vpop.f32.mrf.mxu0  ;;  %v2053_v59 = vpop.f32.mrf.mxu1 }
 0x198   : > { %v2967_v62 = vmax.f32 %v2711_v49, 0.0  ;;  %v3095_v63 = vmax.f32 %v2839_v50, 0.0  ;;  %v2451_v2 = vmul.f32 %v7142_v46, %v1541_v58  ;;  %v2579_v3 = vmul.f32 %v7142_v46, %v2053_v59 }
 0x199   : > { %v5352_v0 = vpack.c.bf16 %v2969_v56, %v2968_v54  ;;  %v5672_v1 = vpack.c.bf16 %v3097_v57, %v3096_v55  ;;  %v6216_v4 = vpop.f32.mrf.mxu0  ;;  %v6344_v5 = vpop.f32.mrf.mxu1  ;;  %v2716_v8 = vadd.f32 %v7146_v51, %v2453_v52  ;;  %v2844_v9 = vadd.f32 %v7146_v51, %v2581_v53  ;;  %v7406_v54 = vld [vmem:[#allocation7] ss:$0 sm:$0xff] }
 0x19a   : > { %v5347_v6 = vpack.c.bf16 %v2967_v62, %v2966_v60  ;;  %v5667_v7 = vpack.c.bf16 %v3095_v63, %v3094_v61  ;;  %v2454_v10 = vmul.f32 %v6216_v4, %v7142_v46  ;;  %v2582_v11 = vmul.f32 %v6344_v5, %v7142_v46  ;;  %v7412_v60 = vld [vmem:[#allocation8] ss:$0 sm:$0xff] }
 0x19b   : > { %5912 = vst [vmem:[%s7175_s21 + $0x98] sm:$0xff] %v5352_v0   ;;  %5976 = vst [vmem:[%s7175_s21 + $0x298] sm:$0xff] %v5672_v1   ;;  %v1544_v12 = vpop.f32.mrf.mxu0  ;;  %v2056_v13 = vpop.f32.mrf.mxu1  ;;  %v2714_v14 = vadd.f32 %v7146_v51, %v2451_v2  ;;  %v2842_v15 = vadd.f32 %v7146_v51, %v2579_v3  ;;  %v2972_v22 = vmax.f32 %v2716_v8, 0.0  ;;  %v3100_v23 = vmax.f32 %v2844_v9, 0.0 }
 0x19c   : > { %5911 = vst [vmem:[%s7175_s21 + $0x90] sm:$0xff] %v5347_v6   ;;  %5975 = vst [vmem:[%s7175_s21 + $0x290] sm:$0xff] %v5667_v7   ;;  %v2452_v16 = vmul.f32 %v7142_v46, %v1544_v12  ;;  %v2580_v17 = vmul.f32 %v7142_v46, %v2056_v13  ;;  %v2717_v18 = vadd.f32 %v7146_v51, %v2454_v10 }
 0x19d   : > { %v2845_v19 = vadd.f32 %v7146_v51, %v2582_v11  ;;  %v6219_v20 = vpop.f32.mrf.mxu0  ;;  %v6347_v21 = vpop.f32.mrf.mxu1  ;;  %v2970_v32 = vmax.f32 %v2714_v14, 0.0  ;;  %v3098_v33 = vmax.f32 %v2842_v15, 0.0 }
 0x19e   : > { %v2715_v24 = vadd.f32 %v7146_v51, %v2452_v16  ;;  %v2843_v25 = vadd.f32 %v7146_v51, %v2580_v17  ;;  %v2973_v26 = vmax.f32 %v2717_v18, 0.0  ;;  %v2457_v28 = vmul.f32 %v6219_v20, %v7142_v46 }
 0x19f   : > { %v3101_v27 = vmax.f32 %v2845_v19, 0.0  ;;  %v2585_v29 = vmul.f32 %v6347_v21, %v7142_v46  ;;  %v1557_v30 = vpop.f32.mrf.mxu0  ;;  %v2069_v31 = vpop.f32.mrf.mxu1 }
 0x1a0   : > { %v2971_v34 = vmax.f32 %v2715_v24, 0.0  ;;  %v3099_v35 = vmax.f32 %v2843_v25, 0.0  ;;  %v5362_v36 = vpack.c.bf16 %v2973_v26, %v2972_v22  ;;  %v2455_v38 = vmul.f32 %v7142_v46, %v1557_v30 }
 0x1a1   : > { %v5682_v37 = vpack.c.bf16 %v3101_v27, %v3100_v23  ;;  %v2583_v39 = vmul.f32 %v7142_v46, %v2069_v31  ;;  %v6220_v40 = vpop.f32.mrf.mxu0  ;;  %v6348_v41 = vpop.f32.mrf.mxu1  ;;  %v2720_v44 = vadd.f32 %v7146_v51, %v2457_v28  ;;  %v2848_v45 = vadd.f32 %v7146_v51, %v2585_v29 }
 0x1a2   : > { %v5357_v42 = vpack.c.bf16 %v2971_v34, %v2970_v32  ;;  %v5677_v43 = vpack.c.bf16 %v3099_v35, %v3098_v33  ;;  %5914 = vst [vmem:[%s7175_s21 + $0xa8] sm:$0xff] %v5362_v36   ;;  %v2458_v47 = vmul.f32 %v6220_v40, %v7142_v46  ;;  %v2586_v48 = vmul.f32 %v6348_v41, %v7142_v46 }
 0x1a3   : > { %5978 = vst [vmem:[%s7175_s21 + $0x2a8] sm:$0xff] %v5682_v37   ;;  %v1560_v49 = vpop.f32.mrf.mxu0  ;;  %v2072_v50 = vpop.f32.mrf.mxu1  ;;  %v2718_v52 = vadd.f32 %v7146_v51, %v2455_v38  ;;  %v2846_v53 = vadd.f32 %v7146_v51, %v2583_v39  ;;  %v2976_v1 = vmax.f32 %v2720_v44, 0.0  ;;  %v3104_v2 = vmax.f32 %v2848_v45, 0.0 }
 0x1a4   : > { %5913 = vst [vmem:[%s7175_s21 + $0xa0] sm:$0xff] %v5357_v42   ;;  %5977 = vst [vmem:[%s7175_s21 + $0x2a0] sm:$0xff] %v5677_v43   ;;  %v2456_v55 = vmul.f32 %v7406_v54, %v1560_v49  ;;  %v2584_v56 = vmul.f32 %v7406_v54, %v2072_v50  ;;  %v2721_v57 = vadd.f32 %v7146_v51, %v2458_v47 }
 0x1a5   : > { %v2849_v58 = vadd.f32 %v7146_v51, %v2586_v48  ;;  %v6223_v59 = vpop.f32.mrf.mxu0  ;;  %v6351_v46 = vpop.f32.mrf.mxu1  ;;  %v2974_v51 = vmax.f32 %v2718_v52, 0.0  ;;  %v3102_v7 = vmax.f32 %v2846_v53, 0.0 }
 0x1a6   : > { %v2719_v61 = vadd.f32 %v7412_v60, %v2456_v55  ;;  %v2847_v62 = vadd.f32 %v7412_v60, %v2584_v56  ;;  %v2461_v63 = vmul.f32 %v7406_v54, %v6223_v59  ;;  %v2589_v0 = vmul.f32 %v7406_v54, %v6351_v46 }
 0x1a7   : > { %v2977_v3 = vmax.f32 %v2721_v57, 0.0  ;;  %v3105_v4 = vmax.f32 %v2849_v58, 0.0  ;;  %v1573_v5 = vpop.f32.mrf.mxu0  ;;  %v2085_v6 = vpop.f32.mrf.mxu1 }
 0x1a8   : > { %v2975_v8 = vmax.f32 %v2719_v61, 0.0  ;;  %v3103_v9 = vmax.f32 %v2847_v62, 0.0  ;;  %v2459_v12 = vmul.f32 %v7406_v54, %v1573_v5  ;;  %v2587_v13 = vmul.f32 %v7406_v54, %v2085_v6 }
 0x1a9   : > { %v5372_v10 = vpack.c.bf16 %v2977_v3, %v2976_v1  ;;  %v5692_v11 = vpack.c.bf16 %v3105_v4, %v3104_v2  ;;  %v6224_v14 = vpop.f32.mrf.mxu0  ;;  %v6352_v15 = vpop.f32.mrf.mxu1  ;;  %v2724_v18 = vadd.f32 %v7412_v60, %v2461_v63  ;;  %v2852_v19 = vadd.f32 %v7412_v60, %v2589_v0 }
 0x1aa   : > { %v5367_v16 = vpack.c.bf16 %v2975_v8, %v2974_v51  ;;  %v5687_v17 = vpack.c.bf16 %v3103_v9, %v3102_v7  ;;  %v2462_v20 = vmul.f32 %v7406_v54, %v6224_v14  ;;  %v2590_v21 = vmul.f32 %v7406_v54, %v6352_v15 }
 0x1ab   : > { %5916 = vst [vmem:[%s7175_s21 + $0xb8] sm:$0xff] %v5372_v10   ;;  %5980 = vst [vmem:[%s7175_s21 + $0x2b8] sm:$0xff] %v5692_v11   ;;  %v1576_v22 = vpop.f32.mrf.mxu0  ;;  %v2088_v23 = vpop.f32.mrf.mxu1  ;;  %v2722_v24 = vadd.f32 %v7412_v60, %v2459_v12  ;;  %v2850_v25 = vadd.f32 %v7412_v60, %v2587_v13  ;;  %v2980_v32 = vmax.f32 %v2724_v18, 0.0  ;;  %v3108_v33 = vmax.f32 %v2852_v19, 0.0 }
 0x1ac   : > { %5915 = vst [vmem:[%s7175_s21 + $0xb0] sm:$0xff] %v5367_v16   ;;  %5979 = vst [vmem:[%s7175_s21 + $0x2b0] sm:$0xff] %v5687_v17   ;;  %v2460_v26 = vmul.f32 %v7406_v54, %v1576_v22  ;;  %v2588_v27 = vmul.f32 %v7406_v54, %v2088_v23  ;;  %v2725_v28 = vadd.f32 %v7412_v60, %v2462_v20 }
 0x1ad   : > { %v2853_v29 = vadd.f32 %v7412_v60, %v2590_v21  ;;  %v6227_v30 = vpop.f32.mrf.mxu0  ;;  %v6355_v31 = vpop.f32.mrf.mxu1  ;;  %v2978_v42 = vmax.f32 %v2722_v24, 0.0  ;;  %v3106_v43 = vmax.f32 %v2850_v25, 0.0 }
 0x1ae   : > { %v2723_v34 = vadd.f32 %v7412_v60, %v2460_v26  ;;  %v2851_v35 = vadd.f32 %v7412_v60, %v2588_v27  ;;  %v2981_v36 = vmax.f32 %v2725_v28, 0.0  ;;  %v2465_v38 = vmul.f32 %v7406_v54, %v6227_v30 }
 0x1af   : > { %v3109_v37 = vmax.f32 %v2853_v29, 0.0  ;;  %v2593_v39 = vmul.f32 %v7406_v54, %v6355_v31  ;;  %v1589_v40 = vpop.f32.mrf.mxu0  ;;  %v2101_v41 = vpop.f32.mrf.mxu1 }
 0x1b0   : > { %v2979_v44 = vmax.f32 %v2723_v34, 0.0  ;;  %v3107_v45 = vmax.f32 %v2851_v35, 0.0  ;;  %v5382_v47 = vpack.c.bf16 %v2981_v36, %v2980_v32  ;;  %v2463_v49 = vmul.f32 %v7406_v54, %v1589_v40 }
 0x1b1   : > { %v5702_v48 = vpack.c.bf16 %v3109_v37, %v3108_v33  ;;  %v2591_v50 = vmul.f32 %v7406_v54, %v2101_v41  ;;  %v6228_v52 = vpop.f32.mrf.mxu0  ;;  %v6356_v53 = vpop.f32.mrf.mxu1  ;;  %v2728_v57 = vadd.f32 %v7412_v60, %v2465_v38  ;;  %v2856_v58 = vadd.f32 %v7412_v60, %v2593_v39 }
 0x1b2   : > { %v5377_v55 = vpack.c.bf16 %v2979_v44, %v2978_v42  ;;  %v5697_v56 = vpack.c.bf16 %v3107_v45, %v3106_v43  ;;  %5918 = vst [vmem:[%s7175_s21 + $0xc8] sm:$0xff] %v5382_v47   ;;  %v2466_v59 = vmul.f32 %v7406_v54, %v6228_v52  ;;  %v2594_v46 = vmul.f32 %v7406_v54, %v6356_v53 }
 0x1b3   : > { %5982 = vst [vmem:[%s7175_s21 + $0x2c8] sm:$0xff] %v5702_v48   ;;  %v1592_v61 = vpop.f32.mrf.mxu0  ;;  %v2104_v62 = vpop.f32.mrf.mxu1  ;;  %v2726_v63 = vadd.f32 %v7412_v60, %v2463_v49  ;;  %v2854_v0 = vadd.f32 %v7412_v60, %v2591_v50  ;;  %v2984_v10 = vmax.f32 %v2728_v57, 0.0  ;;  %v3112_v11 = vmax.f32 %v2856_v58, 0.0 }
 0x1b4   : > { %5917 = vst [vmem:[%s7175_s21 + $0xc0] sm:$0xff] %v5377_v55   ;;  %5981 = vst [vmem:[%s7175_s21 + $0x2c0] sm:$0xff] %v5697_v56   ;;  %v2464_v1 = vmul.f32 %v7406_v54, %v1592_v61  ;;  %v2592_v2 = vmul.f32 %v7406_v54, %v2104_v62  ;;  %v2729_v3 = vadd.f32 %v7412_v60, %v2466_v59 }
 0x1b5   : > { %v2857_v4 = vadd.f32 %v7412_v60, %v2594_v46  ;;  %v6231_v5 = vpop.f32.mrf.mxu0  ;;  %v6359_v6 = vpop.f32.mrf.mxu1  ;;  %v2982_v16 = vmax.f32 %v2726_v63, 0.0  ;;  %v3110_v17 = vmax.f32 %v2854_v0, 0.0 }
 0x1b6   : > { %v2727_v51 = vadd.f32 %v7412_v60, %v2464_v1  ;;  %v2855_v7 = vadd.f32 %v7412_v60, %v2592_v2  ;;  %v2469_v8 = vmul.f32 %v7406_v54, %v6231_v5  ;;  %v2597_v9 = vmul.f32 %v7406_v54, %v6359_v6 }
 0x1b7   : > { %v2985_v12 = vmax.f32 %v2729_v3, 0.0  ;;  %v3113_v13 = vmax.f32 %v2857_v4, 0.0  ;;  %v1605_v14 = vpop.f32.mrf.mxu0  ;;  %v2117_v15 = vpop.f32.mrf.mxu1 }
 0x1b8   : > { %v2983_v18 = vmax.f32 %v2727_v51, 0.0  ;;  %v3111_v19 = vmax.f32 %v2855_v7, 0.0  ;;  %v2467_v22 = vmul.f32 %v7406_v54, %v1605_v14  ;;  %v2595_v23 = vmul.f32 %v7406_v54, %v2117_v15 }
 0x1b9   : > { %v5392_v20 = vpack.c.bf16 %v2985_v12, %v2984_v10  ;;  %v5712_v21 = vpack.c.bf16 %v3113_v13, %v3112_v11  ;;  %v6232_v24 = vpop.f32.mrf.mxu0  ;;  %v6360_v25 = vpop.f32.mrf.mxu1  ;;  %v2732_v28 = vadd.f32 %v7412_v60, %v2469_v8  ;;  %v2860_v29 = vadd.f32 %v7412_v60, %v2597_v9 }
 0x1ba   : > { %v5387_v26 = vpack.c.bf16 %v2983_v18, %v2982_v16  ;;  %v5707_v27 = vpack.c.bf16 %v3111_v19, %v3110_v17  ;;  %v2470_v30 = vmul.f32 %v7406_v54, %v6232_v24  ;;  %v2598_v31 = vmul.f32 %v7406_v54, %v6360_v25 }
 0x1bb   : > { %5920 = vst [vmem:[%s7175_s21 + $0xd8] sm:$0xff] %v5392_v20   ;;  %5984 = vst [vmem:[%s7175_s21 + $0x2d8] sm:$0xff] %v5712_v21   ;;  %v1608_v32 = vpop.f32.mrf.mxu0  ;;  %v2120_v33 = vpop.f32.mrf.mxu1  ;;  %v2730_v34 = vadd.f32 %v7412_v60, %v2467_v22  ;;  %v2858_v35 = vadd.f32 %v7412_v60, %v2595_v23  ;;  %v2988_v42 = vmax.f32 %v2732_v28, 0.0  ;;  %v3116_v43 = vmax.f32 %v2860_v29, 0.0 }
 0x1bc   : > { %5919 = vst [vmem:[%s7175_s21 + $0xd0] sm:$0xff] %v5387_v26   ;;  %5983 = vst [vmem:[%s7175_s21 + $0x2d0] sm:$0xff] %v5707_v27   ;;  %v2468_v36 = vmul.f32 %v7406_v54, %v1608_v32  ;;  %v2596_v37 = vmul.f32 %v7406_v54, %v2120_v33  ;;  %v2733_v38 = vadd.f32 %v7412_v60, %v2470_v30 }
 0x1bd   : > { %v2861_v39 = vadd.f32 %v7412_v60, %v2598_v31  ;;  %v6235_v40 = vpop.f32.mrf.mxu0  ;;  %v6363_v41 = vpop.f32.mrf.mxu1  ;;  %v2986_v55 = vmax.f32 %v2730_v34, 0.0  ;;  %v3114_v56 = vmax.f32 %v2858_v35, 0.0 }
 0x1be   : > { %v2731_v44 = vadd.f32 %v7412_v60, %v2468_v36  ;;  %v2859_v45 = vadd.f32 %v7412_v60, %v2596_v37  ;;  %v2989_v47 = vmax.f32 %v2733_v38, 0.0  ;;  %v2473_v49 = vmul.f32 %v7406_v54, %v6235_v40 }
 0x1bf   : > { %v3117_v48 = vmax.f32 %v2861_v39, 0.0  ;;  %v2601_v50 = vmul.f32 %v7406_v54, %v6363_v41  ;;  %v1621_v52 = vpop.f32.mrf.mxu0  ;;  %v2133_v53 = vpop.f32.mrf.mxu1 }
 0x1c0   : > { %v2987_v57 = vmax.f32 %v2731_v44, 0.0  ;;  %v3115_v58 = vmax.f32 %v2859_v45, 0.0  ;;  %v5402_v59 = vpack.c.bf16 %v2989_v47, %v2988_v42  ;;  %v2471_v61 = vmul.f32 %v7406_v54, %v1621_v52 }
 0x1c1   : > { %v5722_v46 = vpack.c.bf16 %v3117_v48, %v3116_v43  ;;  %v2599_v62 = vmul.f32 %v7406_v54, %v2133_v53  ;;  %v6236_v63 = vpop.f32.mrf.mxu0  ;;  %v6364_v0 = vpop.f32.mrf.mxu1  ;;  %v2736_v3 = vadd.f32 %v7412_v60, %v2473_v49  ;;  %v2864_v4 = vadd.f32 %v7412_v60, %v2601_v50 }
 0x1c2   : > { %v5397_v1 = vpack.c.bf16 %v2987_v57, %v2986_v55  ;;  %v5717_v2 = vpack.c.bf16 %v3115_v58, %v3114_v56  ;;  %5922 = vst [vmem:[%s7175_s21 + $0xe8] sm:$0xff] %v5402_v59   ;;  %v2474_v5 = vmul.f32 %v7406_v54, %v6236_v63  ;;  %v2602_v6 = vmul.f32 %v7406_v54, %v6364_v0 }
 0x1c3   : > { %5986 = vst [vmem:[%s7175_s21 + $0x2e8] sm:$0xff] %v5722_v46   ;;  %v1624_v51 = vpop.f32.mrf.mxu0  ;;  %v2136_v7 = vpop.f32.mrf.mxu1  ;;  %v2734_v8 = vadd.f32 %v7412_v60, %v2471_v61  ;;  %v2862_v9 = vadd.f32 %v7412_v60, %v2599_v62  ;;  %v2992_v20 = vmax.f32 %v2736_v3, 0.0  ;;  %v3120_v21 = vmax.f32 %v2864_v4, 0.0 }
 0x1c4   : > { %5921 = vst [vmem:[%s7175_s21 + $0xe0] sm:$0xff] %v5397_v1   ;;  %5985 = vst [vmem:[%s7175_s21 + $0x2e0] sm:$0xff] %v5717_v2   ;;  %v2472_v10 = vmul.f32 %v7406_v54, %v1624_v51  ;;  %v2600_v11 = vmul.f32 %v7406_v54, %v2136_v7  ;;  %v2737_v12 = vadd.f32 %v7412_v60, %v2474_v5 }
 0x1c5   : > { %v2865_v13 = vadd.f32 %v7412_v60, %v2602_v6  ;;  %v6239_v14 = vpop.f32.mrf.mxu0  ;;  %v6367_v15 = vpop.f32.mrf.mxu1  ;;  %v2990_v26 = vmax.f32 %v2734_v8, 0.0  ;;  %v3118_v27 = vmax.f32 %v2862_v9, 0.0 }
 0x1c6   : > { %v2735_v16 = vadd.f32 %v7412_v60, %v2472_v10  ;;  %v2863_v17 = vadd.f32 %v7412_v60, %v2600_v11  ;;  %v2477_v18 = vmul.f32 %v7406_v54, %v6239_v14  ;;  %v2605_v19 = vmul.f32 %v7406_v54, %v6367_v15 }
 0x1c7   : > { %v2993_v22 = vmax.f32 %v2737_v12, 0.0  ;;  %v3121_v23 = vmax.f32 %v2865_v13, 0.0  ;;  %v1637_v24 = vpop.f32.mrf.mxu0  ;;  %v2149_v25 = vpop.f32.mrf.mxu1 }
 0x1c8   : > { %v2991_v28 = vmax.f32 %v2735_v16, 0.0  ;;  %v3119_v29 = vmax.f32 %v2863_v17, 0.0  ;;  %v2475_v32 = vmul.f32 %v7406_v54, %v1637_v24  ;;  %v2603_v33 = vmul.f32 %v7406_v54, %v2149_v25 }
 0x1c9   : > { %v5412_v30 = vpack.c.bf16 %v2993_v22, %v2992_v20  ;;  %v5732_v31 = vpack.c.bf16 %v3121_v23, %v3120_v21  ;;  %v6240_v34 = vpop.f32.mrf.mxu0  ;;  %v6368_v35 = vpop.f32.mrf.mxu1  ;;  %v2740_v38 = vadd.f32 %v7412_v60, %v2477_v18  ;;  %v2868_v39 = vadd.f32 %v7412_v60, %v2605_v19 }
 0x1ca   : > { %v5407_v36 = vpack.c.bf16 %v2991_v28, %v2990_v26  ;;  %v5727_v37 = vpack.c.bf16 %v3119_v29, %v3118_v27  ;;  %v2478_v40 = vmul.f32 %v7406_v54, %v6240_v34  ;;  %v2606_v41 = vmul.f32 %v7406_v54, %v6368_v35 }
 0x1cb   : > { %5924 = vst [vmem:[%s7175_s21 + $0xf8] sm:$0xff] %v5412_v30   ;;  %5988 = vst [vmem:[%s7175_s21 + $0x2f8] sm:$0xff] %v5732_v31   ;;  %v1640_v42 = vpop.f32.mrf.mxu0  ;;  %v2152_v43 = vpop.f32.mrf.mxu1  ;;  %v2738_v44 = vadd.f32 %v7412_v60, %v2475_v32  ;;  %v2866_v45 = vadd.f32 %v7412_v60, %v2603_v33  ;;  %v2996_v55 = vmax.f32 %v2740_v38, 0.0  ;;  %v3124_v56 = vmax.f32 %v2868_v39, 0.0 }
 0x1cc   : > { %5923 = vst [vmem:[%s7175_s21 + $0xf0] sm:$0xff] %v5407_v36   ;;  %5987 = vst [vmem:[%s7175_s21 + $0x2f0] sm:$0xff] %v5727_v37   ;;  %v2476_v47 = vmul.f32 %v7406_v54, %v1640_v42  ;;  %v2604_v48 = vmul.f32 %v7406_v54, %v2152_v43  ;;  %v2741_v49 = vadd.f32 %v7412_v60, %v2478_v40 }
 0x1cd   : > { %v2869_v50 = vadd.f32 %v7412_v60, %v2606_v41  ;;  %v6243_v52 = vpop.f32.mrf.mxu0  ;;  %v6371_v53 = vpop.f32.mrf.mxu1  ;;  %v2994_v1 = vmax.f32 %v2738_v44, 0.0  ;;  %v3122_v2 = vmax.f32 %v2866_v45, 0.0 }
 0x1ce   : > { %v2739_v57 = vadd.f32 %v7412_v60, %v2476_v47  ;;  %v2867_v58 = vadd.f32 %v7412_v60, %v2604_v48  ;;  %v2997_v59 = vmax.f32 %v2741_v49, 0.0  ;;  %v2481_v61 = vmul.f32 %v7406_v54, %v6243_v52 }
 0x1cf   : > { %v3125_v46 = vmax.f32 %v2869_v50, 0.0  ;;  %v2609_v62 = vmul.f32 %v7406_v54, %v6371_v53  ;;  %v1653_v63 = vpop.f32.mrf.mxu0  ;;  %v2165_v0 = vpop.f32.mrf.mxu1 }
 0x1d0   : > { %v2995_v3 = vmax.f32 %v2739_v57, 0.0  ;;  %v3123_v4 = vmax.f32 %v2867_v58, 0.0  ;;  %v5422_v5 = vpack.c.bf16 %v2997_v59, %v2996_v55  ;;  %v2479_v51 = vmul.f32 %v7406_v54, %v1653_v63 }
 0x1d1   : > { %v5742_v6 = vpack.c.bf16 %v3125_v46, %v3124_v56  ;;  %v2607_v7 = vmul.f32 %v7406_v54, %v2165_v0  ;;  %v6244_v8 = vpop.f32.mrf.mxu0  ;;  %v6372_v9 = vpop.f32.mrf.mxu1  ;;  %v2744_v12 = vadd.f32 %v7412_v60, %v2481_v61  ;;  %v2872_v13 = vadd.f32 %v7412_v60, %v2609_v62 }
 0x1d2   : > { %v5417_v10 = vpack.c.bf16 %v2995_v3, %v2994_v1  ;;  %v5737_v11 = vpack.c.bf16 %v3123_v4, %v3122_v2  ;;  %5926 = vst [vmem:[%s7175_s21 + $0x108] sm:$0xff] %v5422_v5   ;;  %v2482_v14 = vmul.f32 %v7406_v54, %v6244_v8  ;;  %v2610_v15 = vmul.f32 %v7406_v54, %v6372_v9 }
 0x1d3   : > { %5990 = vst [vmem:[%s7175_s21 + $0x308] sm:$0xff] %v5742_v6   ;;  %v1656_v16 = vpop.f32.mrf.mxu0  ;;  %v2168_v17 = vpop.f32.mrf.mxu1  ;;  %v2742_v18 = vadd.f32 %v7412_v60, %v2479_v51  ;;  %v2870_v19 = vadd.f32 %v7412_v60, %v2607_v7  ;;  %v3000_v30 = vmax.f32 %v2744_v12, 0.0  ;;  %v3128_v31 = vmax.f32 %v2872_v13, 0.0 }
 0x1d4   : > { %5925 = vst [vmem:[%s7175_s21 + $0x100] sm:$0xff] %v5417_v10   ;;  %5989 = vst [vmem:[%s7175_s21 + $0x300] sm:$0xff] %v5737_v11   ;;  %v2480_v20 = vmul.f32 %v7406_v54, %v1656_v16  ;;  %v2608_v21 = vmul.f32 %v7406_v54, %v2168_v17  ;;  %v2745_v22 = vadd.f32 %v7412_v60, %v2482_v14 }
 0x1d5   : > { %v2873_v23 = vadd.f32 %v7412_v60, %v2610_v15  ;;  %v6247_v24 = vpop.f32.mrf.mxu0  ;;  %v6375_v25 = vpop.f32.mrf.mxu1  ;;  %v2998_v36 = vmax.f32 %v2742_v18, 0.0  ;;  %v3126_v37 = vmax.f32 %v2870_v19, 0.0 }
 0x1d6   : > { %v2743_v26 = vadd.f32 %v7412_v60, %v2480_v20  ;;  %v2871_v27 = vadd.f32 %v7412_v60, %v2608_v21  ;;  %v2485_v28 = vmul.f32 %v7406_v54, %v6247_v24  ;;  %v2613_v29 = vmul.f32 %v7406_v54, %v6375_v25 }
 0x1d7   : > { %v3001_v32 = vmax.f32 %v2745_v22, 0.0  ;;  %v3129_v33 = vmax.f32 %v2873_v23, 0.0  ;;  %v1669_v34 = vpop.f32.mrf.mxu0  ;;  %v2181_v35 = vpop.f32.mrf.mxu1 }
 0x1d8   : > { %v2999_v38 = vmax.f32 %v2743_v26, 0.0  ;;  %v3127_v39 = vmax.f32 %v2871_v27, 0.0  ;;  %v2483_v42 = vmul.f32 %v7406_v54, %v1669_v34  ;;  %v2611_v43 = vmul.f32 %v7406_v54, %v2181_v35 }
 0x1d9   : > { %v5432_v40 = vpack.c.bf16 %v3001_v32, %v3000_v30  ;;  %v5752_v41 = vpack.c.bf16 %v3129_v33, %v3128_v31  ;;  %v6248_v44 = vpop.f32.mrf.mxu0  ;;  %v6376_v45 = vpop.f32.mrf.mxu1  ;;  %v2748_v49 = vadd.f32 %v7412_v60, %v2485_v28  ;;  %v2876_v50 = vadd.f32 %v7412_v60, %v2613_v29 }
 0x1da   : > { %v5427_v47 = vpack.c.bf16 %v2999_v38, %v2998_v36  ;;  %v5747_v48 = vpack.c.bf16 %v3127_v39, %v3126_v37  ;;  %v2486_v52 = vmul.f32 %v7406_v54, %v6248_v44  ;;  %v2614_v53 = vmul.f32 %v7406_v54, %v6376_v45 }
 0x1db   : > { %5928 = vst [vmem:[%s7175_s21 + $0x118] sm:$0xff] %v5432_v40   ;;  %5992 = vst [vmem:[%s7175_s21 + $0x318] sm:$0xff] %v5752_v41   ;;  %v1672_v55 = vpop.f32.mrf.mxu0  ;;  %v2184_v56 = vpop.f32.mrf.mxu1  ;;  %v2746_v57 = vadd.f32 %v7412_v60, %v2483_v42  ;;  %v2874_v58 = vadd.f32 %v7412_v60, %v2611_v43  ;;  %v3004_v1 = vmax.f32 %v2748_v49, 0.0  ;;  %v3132_v2 = vmax.f32 %v2876_v50, 0.0 }
 0x1dc   : > { %5927 = vst [vmem:[%s7175_s21 + $0x110] sm:$0xff] %v5427_v47   ;;  %5991 = vst [vmem:[%s7175_s21 + $0x310] sm:$0xff] %v5747_v48   ;;  %v2484_v59 = vmul.f32 %v7406_v54, %v1672_v55  ;;  %v2612_v46 = vmul.f32 %v7406_v54, %v2184_v56  ;;  %v2749_v61 = vadd.f32 %v7412_v60, %v2486_v52 }
 0x1dd   : > { %v2877_v62 = vadd.f32 %v7412_v60, %v2614_v53  ;;  %v6251_v63 = vpop.f32.mrf.mxu0  ;;  %v6379_v0 = vpop.f32.mrf.mxu1  ;;  %v3002_v10 = vmax.f32 %v2746_v57, 0.0  ;;  %v3130_v11 = vmax.f32 %v2874_v58, 0.0 }
 0x1de   : > { %v2747_v3 = vadd.f32 %v7412_v60, %v2484_v59  ;;  %v2875_v4 = vadd.f32 %v7412_v60, %v2612_v46  ;;  %v3005_v5 = vmax.f32 %v2749_v61, 0.0  ;;  %v2489_v51 = vmul.f32 %v7406_v54, %v6251_v63 }
 0x1df   : > { %v3133_v6 = vmax.f32 %v2877_v62, 0.0  ;;  %v2617_v7 = vmul.f32 %v7406_v54, %v6379_v0  ;;  %v1685_v8 = vpop.f32.mrf.mxu0  ;;  %v2197_v9 = vpop.f32.mrf.mxu1 }
 0x1e0   : > { %v3003_v12 = vmax.f32 %v2747_v3, 0.0  ;;  %v3131_v13 = vmax.f32 %v2875_v4, 0.0  ;;  %v5442_v14 = vpack.c.bf16 %v3005_v5, %v3004_v1  ;;  %v2487_v16 = vmul.f32 %v7406_v54, %v1685_v8 }
 0x1e1   : > { %v5762_v15 = vpack.c.bf16 %v3133_v6, %v3132_v2  ;;  %v2615_v17 = vmul.f32 %v7406_v54, %v2197_v9  ;;  %v6252_v18 = vpop.f32.mrf.mxu0  ;;  %v6380_v19 = vpop.f32.mrf.mxu1  ;;  %v2752_v22 = vadd.f32 %v7412_v60, %v2489_v51  ;;  %v2880_v23 = vadd.f32 %v7412_v60, %v2617_v7 }
 0x1e2   : > { %v5437_v20 = vpack.c.bf16 %v3003_v12, %v3002_v10  ;;  %v5757_v21 = vpack.c.bf16 %v3131_v13, %v3130_v11  ;;  %5930 = vst [vmem:[%s7175_s21 + $0x128] sm:$0xff] %v5442_v14   ;;  %v2490_v24 = vmul.f32 %v7406_v54, %v6252_v18  ;;  %v2618_v25 = vmul.f32 %v7406_v54, %v6380_v19 }
 0x1e3   : > { %5994 = vst [vmem:[%s7175_s21 + $0x328] sm:$0xff] %v5762_v15   ;;  %v1688_v26 = vpop.f32.mrf.mxu0  ;;  %v2200_v27 = vpop.f32.mrf.mxu1  ;;  %v2750_v28 = vadd.f32 %v7412_v60, %v2487_v16  ;;  %v2878_v29 = vadd.f32 %v7412_v60, %v2615_v17  ;;  %v3008_v40 = vmax.f32 %v2752_v22, 0.0  ;;  %v3136_v41 = vmax.f32 %v2880_v23, 0.0 }
 0x1e4   : > { %5929 = vst [vmem:[%s7175_s21 + $0x120] sm:$0xff] %v5437_v20   ;;  %5993 = vst [vmem:[%s7175_s21 + $0x320] sm:$0xff] %v5757_v21   ;;  %v2488_v30 = vmul.f32 %v7406_v54, %v1688_v26  ;;  %v2616_v31 = vmul.f32 %v7406_v54, %v2200_v27  ;;  %v2753_v32 = vadd.f32 %v7412_v60, %v2490_v24 }
 0x1e5   : > { %v2881_v33 = vadd.f32 %v7412_v60, %v2618_v25  ;;  %v6255_v34 = vpop.f32.mrf.mxu0  ;;  %v6383_v35 = vpop.f32.mrf.mxu1  ;;  %v3006_v47 = vmax.f32 %v2750_v28, 0.0  ;;  %v3134_v48 = vmax.f32 %v2878_v29, 0.0 }
 0x1e6   : > { %v2751_v36 = vadd.f32 %v7412_v60, %v2488_v30  ;;  %v2879_v37 = vadd.f32 %v7412_v60, %v2616_v31  ;;  %v2493_v38 = vmul.f32 %v7406_v54, %v6255_v34  ;;  %v2621_v39 = vmul.f32 %v7406_v54, %v6383_v35 }
 0x1e7   : > { %v3009_v42 = vmax.f32 %v2753_v32, 0.0  ;;  %v3137_v43 = vmax.f32 %v2881_v33, 0.0  ;;  %v1701_v44 = vpop.f32.mrf.mxu0  ;;  %v2213_v45 = vpop.f32.mrf.mxu1 }
 0x1e8   : > { %v3007_v49 = vmax.f32 %v2751_v36, 0.0  ;;  %v3135_v50 = vmax.f32 %v2879_v37, 0.0  ;;  %v2491_v55 = vmul.f32 %v7406_v54, %v1701_v44  ;;  %v2619_v56 = vmul.f32 %v7406_v54, %v2213_v45 }
 0x1e9   : > { %v5452_v52 = vpack.c.bf16 %v3009_v42, %v3008_v40  ;;  %v5772_v53 = vpack.c.bf16 %v3137_v43, %v3136_v41  ;;  %v6256_v57 = vpop.f32.mrf.mxu0  ;;  %v6384_v58 = vpop.f32.mrf.mxu1  ;;  %v2756_v61 = vadd.f32 %v7412_v60, %v2493_v38  ;;  %v2884_v62 = vadd.f32 %v7412_v60, %v2621_v39 }
 0x1ea   : > { %v5447_v59 = vpack.c.bf16 %v3007_v49, %v3006_v47  ;;  %v5767_v46 = vpack.c.bf16 %v3135_v50, %v3134_v48  ;;  %v2494_v63 = vmul.f32 %v7406_v54, %v6256_v57  ;;  %v2622_v0 = vmul.f32 %v7406_v54, %v6384_v58 }
 0x1eb   : > { %5932 = vst [vmem:[%s7175_s21 + $0x138] sm:$0xff] %v5452_v52   ;;  %5996 = vst [vmem:[%s7175_s21 + $0x338] sm:$0xff] %v5772_v53   ;;  %v1704_v1 = vpop.f32.mrf.mxu0  ;;  %v2216_v2 = vpop.f32.mrf.mxu1  ;;  %v2754_v3 = vadd.f32 %v7412_v60, %v2491_v55  ;;  %v2882_v4 = vadd.f32 %v7412_v60, %v2619_v56  ;;  %v3012_v10 = vmax.f32 %v2756_v61, 0.0  ;;  %v3140_v11 = vmax.f32 %v2884_v62, 0.0 }
 0x1ec   : > { %5931 = vst [vmem:[%s7175_s21 + $0x130] sm:$0xff] %v5447_v59   ;;  %5995 = vst [vmem:[%s7175_s21 + $0x330] sm:$0xff] %v5767_v46   ;;  %v2492_v5 = vmul.f32 %v7406_v54, %v1704_v1  ;;  %v2620_v6 = vmul.f32 %v7406_v54, %v2216_v2  ;;  %v2757_v51 = vadd.f32 %v7412_v60, %v2494_v63 }
 0x1ed   : > { %v2885_v7 = vadd.f32 %v7412_v60, %v2622_v0  ;;  %v6259_v8 = vpop.f32.mrf.mxu0  ;;  %v6387_v9 = vpop.f32.mrf.mxu1  ;;  %v3010_v20 = vmax.f32 %v2754_v3, 0.0  ;;  %v3138_v21 = vmax.f32 %v2882_v4, 0.0 }
 0x1ee   : > { %v2755_v12 = vadd.f32 %v7412_v60, %v2492_v5  ;;  %v2883_v13 = vadd.f32 %v7412_v60, %v2620_v6  ;;  %v3013_v14 = vmax.f32 %v2757_v51, 0.0  ;;  %v2497_v16 = vmul.f32 %v7406_v54, %v6259_v8 }
 0x1ef   : > { %v3141_v15 = vmax.f32 %v2885_v7, 0.0  ;;  %v2625_v17 = vmul.f32 %v7406_v54, %v6387_v9  ;;  %v1717_v18 = vpop.f32.mrf.mxu0  ;;  %v2229_v19 = vpop.f32.mrf.mxu1 }
 0x1f0   : > { %v3011_v22 = vmax.f32 %v2755_v12, 0.0  ;;  %v3139_v23 = vmax.f32 %v2883_v13, 0.0  ;;  %v5462_v24 = vpack.c.bf16 %v3013_v14, %v3012_v10  ;;  %v2495_v26 = vmul.f32 %v7406_v54, %v1717_v18 }
 0x1f1   : > { %v5782_v25 = vpack.c.bf16 %v3141_v15, %v3140_v11  ;;  %v2623_v27 = vmul.f32 %v7406_v54, %v2229_v19  ;;  %v6260_v28 = vpop.f32.mrf.mxu0  ;;  %v6388_v29 = vpop.f32.mrf.mxu1  ;;  %v2760_v32 = vadd.f32 %v7412_v60, %v2497_v16  ;;  %v2888_v33 = vadd.f32 %v7412_v60, %v2625_v17 }
 0x1f2   : > { %v5457_v30 = vpack.c.bf16 %v3011_v22, %v3010_v20  ;;  %v5777_v31 = vpack.c.bf16 %v3139_v23, %v3138_v21  ;;  %5934 = vst [vmem:[%s7175_s21 + $0x148] sm:$0xff] %v5462_v24   ;;  %v2498_v34 = vmul.f32 %v7406_v54, %v6260_v28  ;;  %v2626_v35 = vmul.f32 %v7406_v54, %v6388_v29 }
 0x1f3   : > { %5998 = vst [vmem:[%s7175_s21 + $0x348] sm:$0xff] %v5782_v25   ;;  %v1720_v36 = vpop.f32.mrf.mxu0  ;;  %v2232_v37 = vpop.f32.mrf.mxu1  ;;  %v2758_v38 = vadd.f32 %v7412_v60, %v2495_v26  ;;  %v2886_v39 = vadd.f32 %v7412_v60, %v2623_v27  ;;  %v3016_v52 = vmax.f32 %v2760_v32, 0.0  ;;  %v3144_v53 = vmax.f32 %v2888_v33, 0.0 }
 0x1f4   : > { %5933 = vst [vmem:[%s7175_s21 + $0x140] sm:$0xff] %v5457_v30   ;;  %5997 = vst [vmem:[%s7175_s21 + $0x340] sm:$0xff] %v5777_v31   ;;  %v2496_v40 = vmul.f32 %v7406_v54, %v1720_v36  ;;  %v2624_v41 = vmul.f32 %v7406_v54, %v2232_v37  ;;  %v2761_v42 = vadd.f32 %v7412_v60, %v2498_v34 }
 0x1f5   : > { %v2889_v43 = vadd.f32 %v7412_v60, %v2626_v35  ;;  %v6263_v44 = vpop.f32.mrf.mxu0  ;;  %v6391_v45 = vpop.f32.mrf.mxu1  ;;  %v3014_v59 = vmax.f32 %v2758_v38, 0.0  ;;  %v3142_v46 = vmax.f32 %v2886_v39, 0.0 }
 0x1f6   : > { %v2759_v47 = vadd.f32 %v7412_v60, %v2496_v40  ;;  %v2887_v48 = vadd.f32 %v7412_v60, %v2624_v41  ;;  %v2501_v49 = vmul.f32 %v7406_v54, %v6263_v44  ;;  %v2629_v50 = vmul.f32 %v7406_v54, %v6391_v45 }
 0x1f7   : > { %v3017_v55 = vmax.f32 %v2761_v42, 0.0  ;;  %v3145_v56 = vmax.f32 %v2889_v43, 0.0  ;;  %v1733_v57 = vpop.f32.mrf.mxu0  ;;  %v2245_v58 = vpop.f32.mrf.mxu1 }
 0x1f8   : > { %v3015_v61 = vmax.f32 %v2759_v47, 0.0  ;;  %v3143_v62 = vmax.f32 %v2887_v48, 0.0  ;;  %v2499_v1 = vmul.f32 %v7406_v54, %v1733_v57  ;;  %v2627_v2 = vmul.f32 %v7406_v54, %v2245_v58 }
 0x1f9   : > { %v5472_v63 = vpack.c.bf16 %v3017_v55, %v3016_v52  ;;  %v5792_v0 = vpack.c.bf16 %v3145_v56, %v3144_v53  ;;  %v6264_v3 = vpop.f32.mrf.mxu0  ;;  %v6392_v4 = vpop.f32.mrf.mxu1  ;;  %v2764_v51 = vadd.f32 %v7412_v60, %v2501_v49  ;;  %v2892_v7 = vadd.f32 %v7412_v60, %v2629_v50 }
 0x1fa   : > { %v5467_v5 = vpack.c.bf16 %v3015_v61, %v3014_v59  ;;  %v5787_v6 = vpack.c.bf16 %v3143_v62, %v3142_v46  ;;  %v2502_v8 = vmul.f32 %v7406_v54, %v6264_v3  ;;  %v2630_v9 = vmul.f32 %v7406_v54, %v6392_v4 }
 0x1fb   : > { %5936 = vst [vmem:[%s7175_s21 + $0x158] sm:$0xff] %v5472_v63   ;;  %6000 = vst [vmem:[%s7175_s21 + $0x358] sm:$0xff] %v5792_v0   ;;  %v1736_v10 = vpop.f32.mrf.mxu0  ;;  %v2248_v11 = vpop.f32.mrf.mxu1  ;;  %v2762_v12 = vadd.f32 %v7412_v60, %v2499_v1  ;;  %v2890_v13 = vadd.f32 %v7412_v60, %v2627_v2  ;;  %v3020_v20 = vmax.f32 %v2764_v51, 0.0  ;;  %v3148_v21 = vmax.f32 %v2892_v7, 0.0 }
 0x1fc   : > { %5935 = vst [vmem:[%s7175_s21 + $0x150] sm:$0xff] %v5467_v5   ;;  %5999 = vst [vmem:[%s7175_s21 + $0x350] sm:$0xff] %v5787_v6   ;;  %v2500_v14 = vmul.f32 %v7406_v54, %v1736_v10  ;;  %v2628_v15 = vmul.f32 %v7406_v54, %v2248_v11  ;;  %v2765_v16 = vadd.f32 %v7412_v60, %v2502_v8 }
 0x1fd   : > { %v2893_v17 = vadd.f32 %v7412_v60, %v2630_v9  ;;  %v6267_v18 = vpop.f32.mrf.mxu0  ;;  %v6395_v19 = vpop.f32.mrf.mxu1  ;;  %v3018_v30 = vmax.f32 %v2762_v12, 0.0  ;;  %v3146_v31 = vmax.f32 %v2890_v13, 0.0 }
 0x1fe   : > { %v2763_v22 = vadd.f32 %v7412_v60, %v2500_v14  ;;  %v2891_v23 = vadd.f32 %v7412_v60, %v2628_v15  ;;  %v3021_v24 = vmax.f32 %v2765_v16, 0.0  ;;  %v2505_v26 = vmul.f32 %v7406_v54, %v6267_v18  ;;  %v7664_v18 = vld [vmem:[#allocation7] ss:$0 sm:$0xff] }
 0x1ff   : > { %v3149_v25 = vmax.f32 %v2893_v17, 0.0  ;;  %v2633_v27 = vmul.f32 %v7406_v54, %v6395_v19  ;;  %v1749_v28 = vpop.f32.mrf.mxu0  ;;  %v2261_v29 = vpop.f32.mrf.mxu1 }
 0x200   : > { %v3019_v32 = vmax.f32 %v2763_v22, 0.0  ;;  %v3147_v33 = vmax.f32 %v2891_v23, 0.0  ;;  %v5482_v34 = vpack.c.bf16 %v3021_v24, %v3020_v20  ;;  %v2503_v36 = vmul.f32 %v7406_v54, %v1749_v28 }
 0x201   : > { %v5802_v35 = vpack.c.bf16 %v3149_v25, %v3148_v21  ;;  %v2631_v37 = vmul.f32 %v7406_v54, %v2261_v29  ;;  %v6268_v38 = vpop.f32.mrf.mxu0  ;;  %v6396_v39 = vpop.f32.mrf.mxu1  ;;  %v2768_v42 = vadd.f32 %v7412_v60, %v2505_v26  ;;  %v2896_v43 = vadd.f32 %v7412_v60, %v2633_v27 }
 0x202   : > { %v5477_v40 = vpack.c.bf16 %v3019_v32, %v3018_v30  ;;  %v5797_v41 = vpack.c.bf16 %v3147_v33, %v3146_v31  ;;  %5938 = vst [vmem:[%s7175_s21 + $0x168] sm:$0xff] %v5482_v34   ;;  %v2506_v44 = vmul.f32 %v7406_v54, %v6268_v38  ;;  %v2634_v45 = vmul.f32 %v7406_v54, %v6396_v39 }
 0x203   : > { %6002 = vst [vmem:[%s7175_s21 + $0x368] sm:$0xff] %v5802_v35   ;;  %v1752_v47 = vpop.f32.mrf.mxu0  ;;  %v2264_v48 = vpop.f32.mrf.mxu1  ;;  %v2766_v49 = vadd.f32 %v7412_v60, %v2503_v36  ;;  %v2894_v50 = vadd.f32 %v7412_v60, %v2631_v37  ;;  %v3024_v63 = vmax.f32 %v2768_v42, 0.0  ;;  %v3152_v0 = vmax.f32 %v2896_v43, 0.0 }
 0x204   : > { %5937 = vst [vmem:[%s7175_s21 + $0x160] sm:$0xff] %v5477_v40   ;;  %6001 = vst [vmem:[%s7175_s21 + $0x360] sm:$0xff] %v5797_v41   ;;  %v2504_v52 = vmul.f32 %v7406_v54, %v1752_v47  ;;  %v2632_v53 = vmul.f32 %v7406_v54, %v2264_v48  ;;  %v2769_v55 = vadd.f32 %v7412_v60, %v2506_v44 }
 0x205   : > { %v2897_v56 = vadd.f32 %v7412_v60, %v2634_v45  ;;  %v6271_v57 = vpop.f32.mrf.mxu0  ;;  %v6399_v58 = vpop.f32.mrf.mxu1  ;;  %v3022_v5 = vmax.f32 %v2766_v49, 0.0  ;;  %v3150_v6 = vmax.f32 %v2894_v50, 0.0 }
 0x206   : > { %v2767_v59 = vadd.f32 %v7412_v60, %v2504_v52  ;;  %v2895_v46 = vadd.f32 %v7412_v60, %v2632_v53  ;;  %v2509_v61 = vmul.f32 %v7406_v54, %v6271_v57  ;;  %v2637_v62 = vmul.f32 %v7406_v54, %v6399_v58 }
 0x207   : > { %v3025_v1 = vmax.f32 %v2769_v55, 0.0  ;;  %v3153_v2 = vmax.f32 %v2897_v56, 0.0  ;;  %v1765_v3 = vpop.f32.mrf.mxu0  ;;  %v2277_v4 = vpop.f32.mrf.mxu1 }
 0x208   : > { %v3023_v51 = vmax.f32 %v2767_v59, 0.0  ;;  %v3151_v7 = vmax.f32 %v2895_v46, 0.0  ;;  %v2507_v10 = vmul.f32 %v7406_v54, %v1765_v3  ;;  %v2635_v11 = vmul.f32 %v7406_v54, %v2277_v4  ;;  %v7670_v54 = vld [vmem:[#allocation8] ss:$0 sm:$0xff] }
 0x209   : > { %v5492_v8 = vpack.c.bf16 %v3025_v1, %v3024_v63  ;;  %v5812_v9 = vpack.c.bf16 %v3153_v2, %v3152_v0  ;;  %v6272_v12 = vpop.f32.mrf.mxu0  ;;  %v6400_v13 = vpop.f32.mrf.mxu1  ;;  %v2772_v16 = vadd.f32 %v7412_v60, %v2509_v61  ;;  %v2900_v17 = vadd.f32 %v7412_v60, %v2637_v62 }
 0x20a   : > { %v5487_v14 = vpack.c.bf16 %v3023_v51, %v3022_v5  ;;  %v5807_v15 = vpack.c.bf16 %v3151_v7, %v3150_v6  ;;  %v2510_v19 = vmul.f32 %v7664_v18, %v6272_v12  ;;  %v2638_v20 = vmul.f32 %v7664_v18, %v6400_v13 }
 0x20b   : > { %5940 = vst [vmem:[%s7175_s21 + $0x178] sm:$0xff] %v5492_v8   ;;  %6004 = vst [vmem:[%s7175_s21 + $0x378] sm:$0xff] %v5812_v9   ;;  %v1768_v21 = vpop.f32.mrf.mxu0  ;;  %v2280_v22 = vpop.f32.mrf.mxu1  ;;  %v2770_v23 = vadd.f32 %v7670_v54, %v2507_v10  ;;  %v2898_v24 = vadd.f32 %v7670_v54, %v2635_v11  ;;  %v3028_v30 = vmax.f32 %v2772_v16, 0.0  ;;  %v3156_v31 = vmax.f32 %v2900_v17, 0.0 }
 0x20c   : > { %5939 = vst [vmem:[%s7175_s21 + $0x170] sm:$0xff] %v5487_v14   ;;  %6003 = vst [vmem:[%s7175_s21 + $0x370] sm:$0xff] %v5807_v15   ;;  %v2508_v60 = vmul.f32 %v7664_v18, %v1768_v21  ;;  %v2636_v25 = vmul.f32 %v7664_v18, %v2280_v22  ;;  %v2773_v26 = vadd.f32 %v7670_v54, %v2510_v19 }
 0x20d   : > { %v2901_v27 = vadd.f32 %v7670_v54, %v2638_v20  ;;  %v6275_v28 = vpop.f32.mrf.mxu0  ;;  %v6403_v29 = vpop.f32.mrf.mxu1  ;;  %v3026_v40 = vmax.f32 %v2770_v23, 0.0  ;;  %v3154_v41 = vmax.f32 %v2898_v24, 0.0 }
 0x20e   : > { %v2771_v32 = vadd.f32 %v7670_v54, %v2508_v60  ;;  %v2899_v33 = vadd.f32 %v7670_v54, %v2636_v25  ;;  %v3029_v34 = vmax.f32 %v2773_v26, 0.0  ;;  %v2513_v36 = vmul.f32 %v7664_v18, %v6275_v28 }
 0x20f   : > { %v3157_v35 = vmax.f32 %v2901_v27, 0.0  ;;  %v2641_v37 = vmul.f32 %v7664_v18, %v6403_v29  ;;  %v1781_v38 = vpop.f32.mrf.mxu0  ;;  %v2293_v39 = vpop.f32.mrf.mxu1 }
 0x210   : > { %v3027_v42 = vmax.f32 %v2771_v32, 0.0  ;;  %v3155_v43 = vmax.f32 %v2899_v33, 0.0  ;;  %v5502_v44 = vpack.c.bf16 %v3029_v34, %v3028_v30  ;;  %v2511_v47 = vmul.f32 %v7664_v18, %v1781_v38 }
 0x211   : > { %v5822_v45 = vpack.c.bf16 %v3157_v35, %v3156_v31  ;;  %v2639_v48 = vmul.f32 %v7664_v18, %v2293_v39  ;;  %v6276_v49 = vpop.f32.mrf.mxu0  ;;  %v6404_v50 = vpop.f32.mrf.mxu1  ;;  %v2776_v55 = vadd.f32 %v7670_v54, %v2513_v36  ;;  %v2904_v56 = vadd.f32 %v7670_v54, %v2641_v37 }
 0x212   : > { %v5497_v52 = vpack.c.bf16 %v3027_v42, %v3026_v40  ;;  %v5817_v53 = vpack.c.bf16 %v3155_v43, %v3154_v41  ;;  %5942 = vst [vmem:[%s7175_s21 + $0x188] sm:$0xff] %v5502_v44   ;;  %v2514_v57 = vmul.f32 %v7664_v18, %v6276_v49  ;;  %v2642_v58 = vmul.f32 %v7664_v18, %v6404_v50 }
 0x213   : > { %6006 = vst [vmem:[%s7175_s21 + $0x388] sm:$0xff] %v5822_v45   ;;  %v1784_v59 = vpop.f32.mrf.mxu0  ;;  %v2296_v46 = vpop.f32.mrf.mxu1  ;;  %v2774_v61 = vadd.f32 %v7670_v54, %v2511_v47  ;;  %v2902_v62 = vadd.f32 %v7670_v54, %v2639_v48  ;;  %v3032_v8 = vmax.f32 %v2776_v55, 0.0  ;;  %v3160_v9 = vmax.f32 %v2904_v56, 0.0 }
 0x214   : > { %5941 = vst [vmem:[%s7175_s21 + $0x180] sm:$0xff] %v5497_v52   ;;  %6005 = vst [vmem:[%s7175_s21 + $0x380] sm:$0xff] %v5817_v53   ;;  %v2512_v63 = vmul.f32 %v7664_v18, %v1784_v59  ;;  %v2640_v0 = vmul.f32 %v7664_v18, %v2296_v46  ;;  %v2777_v1 = vadd.f32 %v7670_v54, %v2514_v57 }
 0x215   : > { %v2905_v2 = vadd.f32 %v7670_v54, %v2642_v58  ;;  %v6279_v3 = vpop.f32.mrf.mxu0  ;;  %v6407_v4 = vpop.f32.mrf.mxu1  ;;  %v3030_v14 = vmax.f32 %v2774_v61, 0.0  ;;  %v3158_v15 = vmax.f32 %v2902_v62, 0.0 }
 0x216   : > { %v2775_v5 = vadd.f32 %v7670_v54, %v2512_v63  ;;  %v2903_v6 = vadd.f32 %v7670_v54, %v2640_v0  ;;  %v2517_v51 = vmul.f32 %v7664_v18, %v6279_v3  ;;  %v2645_v7 = vmul.f32 %v7664_v18, %v6407_v4 }
 0x217   : > { %v3033_v10 = vmax.f32 %v2777_v1, 0.0  ;;  %v3161_v11 = vmax.f32 %v2905_v2, 0.0  ;;  %v1797_v12 = vpop.f32.mrf.mxu0  ;;  %v2309_v13 = vpop.f32.mrf.mxu1 }
 0x218   : > { %v3031_v16 = vmax.f32 %v2775_v5, 0.0  ;;  %v3159_v17 = vmax.f32 %v2903_v6, 0.0  ;;  %v2515_v21 = vmul.f32 %v7664_v18, %v1797_v12  ;;  %v2643_v22 = vmul.f32 %v7664_v18, %v2309_v13 }
 0x219   : > { %v5512_v19 = vpack.c.bf16 %v3033_v10, %v3032_v8  ;;  %v5832_v20 = vpack.c.bf16 %v3161_v11, %v3160_v9  ;;  %v6280_v23 = vpop.f32.mrf.mxu0  ;;  %v6408_v24 = vpop.f32.mrf.mxu1  ;;  %v2780_v26 = vadd.f32 %v7670_v54, %v2517_v51  ;;  %v2908_v27 = vadd.f32 %v7670_v54, %v2645_v7 }
 0x21a   : > { %v5507_v60 = vpack.c.bf16 %v3031_v16, %v3030_v14  ;;  %v5827_v25 = vpack.c.bf16 %v3159_v17, %v3158_v15  ;;  %v2518_v28 = vmul.f32 %v7664_v18, %v6280_v23  ;;  %v2646_v29 = vmul.f32 %v7664_v18, %v6408_v24 }
 0x21b   : > { %5944 = vst [vmem:[%s7175_s21 + $0x198] sm:$0xff] %v5512_v19   ;;  %6008 = vst [vmem:[%s7175_s21 + $0x398] sm:$0xff] %v5832_v20   ;;  %v1800_v30 = vpop.f32.mrf.mxu0  ;;  %v2312_v31 = vpop.f32.mrf.mxu1  ;;  %v2778_v32 = vadd.f32 %v7670_v54, %v2515_v21  ;;  %v2906_v33 = vadd.f32 %v7670_v54, %v2643_v22  ;;  %v3036_v40 = vmax.f32 %v2780_v26, 0.0  ;;  %v3164_v41 = vmax.f32 %v2908_v27, 0.0 }
 0x21c   : > { %5943 = vst [vmem:[%s7175_s21 + $0x190] sm:$0xff] %v5507_v60   ;;  %6007 = vst [vmem:[%s7175_s21 + $0x390] sm:$0xff] %v5827_v25   ;;  %v2516_v34 = vmul.f32 %v7664_v18, %v1800_v30  ;;  %v2644_v35 = vmul.f32 %v7664_v18, %v2312_v31  ;;  %v2781_v36 = vadd.f32 %v7670_v54, %v2518_v28 }
 0x21d   : > { %v2909_v37 = vadd.f32 %v7670_v54, %v2646_v29  ;;  %v6283_v38 = vpop.f32.mrf.mxu0  ;;  %v6411_v39 = vpop.f32.mrf.mxu1  ;;  %v3034_v52 = vmax.f32 %v2778_v32, 0.0  ;;  %v3162_v53 = vmax.f32 %v2906_v33, 0.0 }
 0x21e   : > { %v2779_v42 = vadd.f32 %v7670_v54, %v2516_v34  ;;  %v2907_v43 = vadd.f32 %v7670_v54, %v2644_v35  ;;  %v3037_v44 = vmax.f32 %v2781_v36, 0.0  ;;  %v2521_v47 = vmul.f32 %v7664_v18, %v6283_v38 }
 0x21f   : > { %v3165_v45 = vmax.f32 %v2909_v37, 0.0  ;;  %v2649_v48 = vmul.f32 %v7664_v18, %v6411_v39  ;;  %v1813_v49 = vpop.f32.mrf.mxu0  ;;  %v2325_v50 = vpop.f32.mrf.mxu1 }
 0x220   : > { %v3035_v55 = vmax.f32 %v2779_v42, 0.0  ;;  %v3163_v56 = vmax.f32 %v2907_v43, 0.0  ;;  %v5522_v57 = vpack.c.bf16 %v3037_v44, %v3036_v40  ;;  %v2519_v59 = vmul.f32 %v7664_v18, %v1813_v49 }
 0x221   : > { %v5842_v58 = vpack.c.bf16 %v3165_v45, %v3164_v41  ;;  %v2647_v46 = vmul.f32 %v7664_v18, %v2325_v50  ;;  %v6284_v61 = vpop.f32.mrf.mxu0  ;;  %v6412_v62 = vpop.f32.mrf.mxu1  ;;  %v2784_v1 = vadd.f32 %v7670_v54, %v2521_v47  ;;  %v2912_v2 = vadd.f32 %v7670_v54, %v2649_v48 }
 0x222   : > { %v5517_v63 = vpack.c.bf16 %v3035_v55, %v3034_v52  ;;  %v5837_v0 = vpack.c.bf16 %v3163_v56, %v3162_v53  ;;  %5946 = vst [vmem:[%s7175_s21 + $0x1a8] sm:$0xff] %v5522_v57   ;;  %v2522_v3 = vmul.f32 %v7664_v18, %v6284_v61  ;;  %v2650_v4 = vmul.f32 %v7664_v18, %v6412_v62 }
 0x223   : > { %6010 = vst [vmem:[%s7175_s21 + $0x3a8] sm:$0xff] %v5842_v58   ;;  %v1816_v5 = vpop.f32.mrf.mxu0  ;;  %v2328_v6 = vpop.f32.mrf.mxu1  ;;  %v2782_v51 = vadd.f32 %v7670_v54, %v2519_v59  ;;  %v2910_v7 = vadd.f32 %v7670_v54, %v2647_v46  ;;  %v3040_v19 = vmax.f32 %v2784_v1, 0.0  ;;  %v3168_v20 = vmax.f32 %v2912_v2, 0.0 }
 0x224   : > { %5945 = vst [vmem:[%s7175_s21 + $0x1a0] sm:$0xff] %v5517_v63   ;;  %6009 = vst [vmem:[%s7175_s21 + $0x3a0] sm:$0xff] %v5837_v0   ;;  %v2520_v8 = vmul.f32 %v7664_v18, %v1816_v5  ;;  %v2648_v9 = vmul.f32 %v7664_v18, %v2328_v6  ;;  %v2785_v10 = vadd.f32 %v7670_v54, %v2522_v3 }
 0x225   : > { %v2913_v11 = vadd.f32 %v7670_v54, %v2650_v4  ;;  %v6287_v12 = vpop.f32.mrf.mxu0  ;;  %v6415_v13 = vpop.f32.mrf.mxu1  ;;  %v3038_v60 = vmax.f32 %v2782_v51, 0.0  ;;  %v3166_v25 = vmax.f32 %v2910_v7, 0.0 }
 0x226   : > { %v2783_v14 = vadd.f32 %v7670_v54, %v2520_v8  ;;  %v2911_v15 = vadd.f32 %v7670_v54, %v2648_v9  ;;  %v2525_v16 = vmul.f32 %v7664_v18, %v6287_v12  ;;  %v2653_v17 = vmul.f32 %v7664_v18, %v6415_v13 }
 0x227   : > { %v3041_v21 = vmax.f32 %v2785_v10, 0.0  ;;  %v3169_v22 = vmax.f32 %v2913_v11, 0.0  ;;  %v1829_v23 = vpop.f32.mrf.mxu0  ;;  %v2341_v24 = vpop.f32.mrf.mxu1 }
 0x228   : > { %v3039_v26 = vmax.f32 %v2783_v14, 0.0  ;;  %v3167_v27 = vmax.f32 %v2911_v15, 0.0  ;;  %v2523_v30 = vmul.f32 %v7664_v18, %v1829_v23  ;;  %v2651_v31 = vmul.f32 %v7664_v18, %v2341_v24 }
 0x229   : > { %v5532_v28 = vpack.c.bf16 %v3041_v21, %v3040_v19  ;;  %v5852_v29 = vpack.c.bf16 %v3169_v22, %v3168_v20  ;;  %v6288_v32 = vpop.f32.mrf.mxu0  ;;  %v6416_v33 = vpop.f32.mrf.mxu1  ;;  %v2788_v36 = vadd.f32 %v7670_v54, %v2525_v16  ;;  %v2916_v37 = vadd.f32 %v7670_v54, %v2653_v17 }
 0x22a   : > { %v5527_v34 = vpack.c.bf16 %v3039_v26, %v3038_v60  ;;  %v5847_v35 = vpack.c.bf16 %v3167_v27, %v3166_v25  ;;  %v2526_v38 = vmul.f32 %v7664_v18, %v6288_v32  ;;  %v2654_v39 = vmul.f32 %v7664_v18, %v6416_v33 }
 0x22b   : > { %5948 = vst [vmem:[%s7175_s21 + $0x1b8] sm:$0xff] %v5532_v28   ;;  %6012 = vst [vmem:[%s7175_s21 + $0x3b8] sm:$0xff] %v5852_v29   ;;  %v1832_v40 = vpop.f32.mrf.mxu0  ;;  %v2344_v41 = vpop.f32.mrf.mxu1  ;;  %v2786_v42 = vadd.f32 %v7670_v54, %v2523_v30  ;;  %v2914_v43 = vadd.f32 %v7670_v54, %v2651_v31  ;;  %v3044_v52 = vmax.f32 %v2788_v36, 0.0  ;;  %v3172_v53 = vmax.f32 %v2916_v37, 0.0 }
 0x22c   : > { %5947 = vst [vmem:[%s7175_s21 + $0x1b0] sm:$0xff] %v5527_v34   ;;  %6011 = vst [vmem:[%s7175_s21 + $0x3b0] sm:$0xff] %v5847_v35   ;;  %v2524_v44 = vmul.f32 %v7664_v18, %v1832_v40  ;;  %v2652_v45 = vmul.f32 %v7664_v18, %v2344_v41  ;;  %v2789_v47 = vadd.f32 %v7670_v54, %v2526_v38 }
 0x22d   : > { %v2917_v48 = vadd.f32 %v7670_v54, %v2654_v39  ;;  %v6291_v49 = vpop.f32.mrf.mxu0  ;;  %v6419_v50 = vpop.f32.mrf.mxu1  ;;  %v3042_v63 = vmax.f32 %v2786_v42, 0.0  ;;  %v3170_v0 = vmax.f32 %v2914_v43, 0.0 }
 0x22e   : > { %v2787_v55 = vadd.f32 %v7670_v54, %v2524_v44  ;;  %v2915_v56 = vadd.f32 %v7670_v54, %v2652_v45  ;;  %v3045_v57 = vmax.f32 %v2789_v47, 0.0  ;;  %v2529_v59 = vmul.f32 %v7664_v18, %v6291_v49 }
 0x22f   : > { %v3173_v58 = vmax.f32 %v2917_v48, 0.0  ;;  %v2657_v46 = vmul.f32 %v7664_v18, %v6419_v50  ;;  %v1845_v61 = vpop.f32.mrf.mxu0  ;;  %v2357_v62 = vpop.f32.mrf.mxu1 }
 0x230   : > { %v3043_v1 = vmax.f32 %v2787_v55, 0.0  ;;  %v3171_v2 = vmax.f32 %v2915_v56, 0.0  ;;  %v5542_v3 = vpack.c.bf16 %v3045_v57, %v3044_v52  ;;  %v2527_v5 = vmul.f32 %v7664_v18, %v1845_v61 }
 0x231   : > { %v5862_v4 = vpack.c.bf16 %v3173_v58, %v3172_v53  ;;  %v2655_v6 = vmul.f32 %v7664_v18, %v2357_v62  ;;  %v6292_v51 = vpop.f32.mrf.mxu0  ;;  %v6420_v7 = vpop.f32.mrf.mxu1  ;;  %v2792_v10 = vadd.f32 %v7670_v54, %v2529_v59  ;;  %v2920_v11 = vadd.f32 %v7670_v54, %v2657_v46 }
 0x232   : > { %v5537_v8 = vpack.c.bf16 %v3043_v1, %v3042_v63  ;;  %v5857_v9 = vpack.c.bf16 %v3171_v2, %v3170_v0  ;;  %5950 = vst [vmem:[%s7175_s21 + $0x1c8] sm:$0xff] %v5542_v3   ;;  %v2530_v12 = vmul.f32 %v7664_v18, %v6292_v51  ;;  %v2658_v13 = vmul.f32 %v7664_v18, %v6420_v7 }
 0x233   : > { %6014 = vst [vmem:[%s7175_s21 + $0x3c8] sm:$0xff] %v5862_v4   ;;  %v1848_v14 = vpop.f32.mrf.mxu0  ;;  %v2360_v15 = vpop.f32.mrf.mxu1  ;;  %v2790_v16 = vadd.f32 %v7670_v54, %v2527_v5  ;;  %v2918_v17 = vadd.f32 %v7670_v54, %v2655_v6  ;;  %v3048_v28 = vmax.f32 %v2792_v10, 0.0  ;;  %v3176_v29 = vmax.f32 %v2920_v11, 0.0 }
 0x234   : > { %5949 = vst [vmem:[%s7175_s21 + $0x1c0] sm:$0xff] %v5537_v8   ;;  %6013 = vst [vmem:[%s7175_s21 + $0x3c0] sm:$0xff] %v5857_v9   ;;  %v2528_v19 = vmul.f32 %v7664_v18, %v1848_v14  ;;  %v2656_v20 = vmul.f32 %v7664_v18, %v2360_v15  ;;  %v2793_v21 = vadd.f32 %v7670_v54, %v2530_v12 }
 0x235   : > { %v2921_v22 = vadd.f32 %v7670_v54, %v2658_v13  ;;  %v6295_v23 = vpop.f32.mrf.mxu0  ;;  %v6423_v24 = vpop.f32.mrf.mxu1  ;;  %v3046_v34 = vmax.f32 %v2790_v16, 0.0  ;;  %v3174_v35 = vmax.f32 %v2918_v17, 0.0 }
 0x236   : > { %v2791_v60 = vadd.f32 %v7670_v54, %v2528_v19  ;;  %v2919_v25 = vadd.f32 %v7670_v54, %v2656_v20  ;;  %v2533_v26 = vmul.f32 %v7664_v18, %v6295_v23  ;;  %v2661_v27 = vmul.f32 %v7664_v18, %v6423_v24 }
 0x237   : > { %v3049_v30 = vmax.f32 %v2793_v21, 0.0  ;;  %v3177_v31 = vmax.f32 %v2921_v22, 0.0  ;;  %v1861_v32 = vpop.f32.mrf.mxu0  ;;  %v2373_v33 = vpop.f32.mrf.mxu1 }
 0x238   : > { %v3047_v36 = vmax.f32 %v2791_v60, 0.0  ;;  %v3175_v37 = vmax.f32 %v2919_v25, 0.0  ;;  %v2531_v40 = vmul.f32 %v7664_v18, %v1861_v32  ;;  %v2659_v41 = vmul.f32 %v7664_v18, %v2373_v33 }
 0x239   : > { %v5552_v38 = vpack.c.bf16 %v3049_v30, %v3048_v28  ;;  %v5872_v39 = vpack.c.bf16 %v3177_v31, %v3176_v29  ;;  %v6296_v42 = vpop.f32.mrf.mxu0  ;;  %v6424_v43 = vpop.f32.mrf.mxu1  ;;  %v2796_v47 = vadd.f32 %v7670_v54, %v2533_v26  ;;  %v2924_v48 = vadd.f32 %v7670_v54, %v2661_v27 }
 0x23a   : > { %v5547_v44 = vpack.c.bf16 %v3047_v36, %v3046_v34  ;;  %v5867_v45 = vpack.c.bf16 %v3175_v37, %v3174_v35  ;;  %v2534_v49 = vmul.f32 %v7664_v18, %v6296_v42  ;;  %v2662_v50 = vmul.f32 %v7664_v18, %v6424_v43 }
 0x23b   : > { %5952 = vst [vmem:[%s7175_s21 + $0x1d8] sm:$0xff] %v5552_v38   ;;  %6016 = vst [vmem:[%s7175_s21 + $0x3d8] sm:$0xff] %v5872_v39   ;;  %v1864_v52 = vpop.f32.mrf.mxu0  ;;  %v2376_v53 = vpop.f32.mrf.mxu1  ;;  %v2794_v55 = vadd.f32 %v7670_v54, %v2531_v40  ;;  %v2922_v56 = vadd.f32 %v7670_v54, %v2659_v41  ;;  %v3052_v63 = vmax.f32 %v2796_v47, 0.0  ;;  %v3180_v0 = vmax.f32 %v2924_v48, 0.0 }
 0x23c   : > { %5951 = vst [vmem:[%s7175_s21 + $0x1d0] sm:$0xff] %v5547_v44   ;;  %6015 = vst [vmem:[%s7175_s21 + $0x3d0] sm:$0xff] %v5867_v45   ;;  %v2532_v57 = vmul.f32 %v7664_v18, %v1864_v52  ;;  %v2660_v58 = vmul.f32 %v7664_v18, %v2376_v53  ;;  %v2797_v59 = vadd.f32 %v7670_v54, %v2534_v49 }
 0x23d   : > { %v2925_v46 = vadd.f32 %v7670_v54, %v2662_v50  ;;  %v6299_v61 = vpop.f32.mrf.mxu0  ;;  %v6427_v62 = vpop.f32.mrf.mxu1  ;;  %v3050_v8 = vmax.f32 %v2794_v55, 0.0  ;;  %v3178_v9 = vmax.f32 %v2922_v56, 0.0 }
 0x23e   : > { %v2795_v1 = vadd.f32 %v7670_v54, %v2532_v57  ;;  %v2923_v2 = vadd.f32 %v7670_v54, %v2660_v58  ;;  %v3053_v3 = vmax.f32 %v2797_v59, 0.0  ;;  %v2537_v5 = vmul.f32 %v7664_v18, %v6299_v61 }
 0x23f   : > { %v3181_v4 = vmax.f32 %v2925_v46, 0.0  ;;  %v2665_v6 = vmul.f32 %v7664_v18, %v6427_v62  ;;  %v1877_v51 = vpop.f32.mrf.mxu0  ;;  %v2389_v7 = vpop.f32.mrf.mxu1 }
 0x240   : > { %v3051_v10 = vmax.f32 %v2795_v1, 0.0  ;;  %v3179_v11 = vmax.f32 %v2923_v2, 0.0  ;;  %v5562_v12 = vpack.c.bf16 %v3053_v3, %v3052_v63  ;;  %v2535_v14 = vmul.f32 %v7664_v18, %v1877_v51 }
 0x241   : > { %v5882_v13 = vpack.c.bf16 %v3181_v4, %v3180_v0  ;;  %v2663_v15 = vmul.f32 %v7664_v18, %v2389_v7  ;;  %v6300_v16 = vpop.f32.mrf.mxu0  ;;  %v6428_v17 = vpop.f32.mrf.mxu1  ;;  %v2800_v21 = vadd.f32 %v7670_v54, %v2537_v5  ;;  %v2928_v22 = vadd.f32 %v7670_v54, %v2665_v6 }
 0x242   : > { %v5557_v19 = vpack.c.bf16 %v3051_v10, %v3050_v8  ;;  %v5877_v20 = vpack.c.bf16 %v3179_v11, %v3178_v9  ;;  %5954 = vst [vmem:[%s7175_s21 + $0x1e8] sm:$0xff] %v5562_v12   ;;  %v2538_v23 = vmul.f32 %v7664_v18, %v6300_v16  ;;  %v2666_v24 = vmul.f32 %v7664_v18, %v6428_v17 }
 0x243   : > { %6018 = vst [vmem:[%s7175_s21 + $0x3e8] sm:$0xff] %v5882_v13   ;;  %v1880_v60 = vpop.f32.mrf.mxu0  ;;  %v2392_v25 = vpop.f32.mrf.mxu1  ;;  %v2798_v26 = vadd.f32 %v7670_v54, %v2535_v14  ;;  %v2926_v27 = vadd.f32 %v7670_v54, %v2663_v15  ;;  %v3056_v34 = vmax.f32 %v2800_v21, 0.0  ;;  %v3184_v35 = vmax.f32 %v2928_v22, 0.0 }
 0x244   : > { %5953 = vst [vmem:[%s7175_s21 + $0x1e0] sm:$0xff] %v5557_v19   ;;  %6017 = vst [vmem:[%s7175_s21 + $0x3e0] sm:$0xff] %v5877_v20   ;;  %v2536_v28 = vmul.f32 %v7664_v18, %v1880_v60  ;;  %v2664_v29 = vmul.f32 %v7664_v18, %v2392_v25  ;;  %v2801_v30 = vadd.f32 %v7670_v54, %v2538_v23 }
 0x245   : > { %v2929_v31 = vadd.f32 %v7670_v54, %v2666_v24  ;;  %v3054_v18 = vmax.f32 %v2798_v26, 0.0  ;;  %v3182_v38 = vmax.f32 %v2926_v27, 0.0 }
 0x246   : > { %v2799_v32 = vadd.f32 %v7670_v54, %v2536_v28  ;;  %v2927_v33 = vadd.f32 %v7670_v54, %v2664_v29  ;;  %v3057_v36 = vmax.f32 %v2801_v30, 0.0 }
 0x247   : > { %v3185_v37 = vmax.f32 %v2929_v31, 0.0 }
 0x248   : > { %v3055_v39 = vmax.f32 %v2799_v32, 0.0  ;;  %v3183_v40 = vmax.f32 %v2927_v33, 0.0  ;;  %v5572_v41 = vpack.c.bf16 %v3057_v36, %v3056_v34 }
 0x249   : > { %v5892_v42 = vpack.c.bf16 %v3185_v37, %v3184_v35 }
 0x24a   : > { %v5567_v54 = vpack.c.bf16 %v3055_v39, %v3054_v18  ;;  %v5887_v43 = vpack.c.bf16 %v3183_v40, %v3182_v38  ;;  %5956 = vst [vmem:[%s7175_s21 + $0x1f8] sm:$0xff] %v5572_v41  }
 0x24b   : > { %6020 = vst [vmem:[%s7175_s21 + $0x3f8] sm:$0xff] %v5892_v42  }
 0x24c   : > { %5955 = vst [vmem:[%s7175_s21 + $0x1f0] sm:$0xff] %v5567_v54   ;;  %6019 = vst [vmem:[%s7175_s21 + $0x3f0] sm:$0xff] %v5887_v43  }
 0x24d   : > { %6785 = shalt.err (!%p6782_p0)
}
 0x24e   : > { %s6786_s11 = scalar_lea.hbm %s7825_s19, 16384  ;;  %s6790_s26 = scalar_lea.hbm %s7877_s4, 81920 }
 0x24f   : > { %p6787_p13 = scmp.ne.s32.totalorder %s7825_s19, %s6786_s11  ;;  %p6791_p9 = scmp.lt.s32.totalorder %s7825_s19, %s7877_s4 }
 0x250   : > { %p6792_p10 = scmp.lt.s32.totalorder %s6790_s26, %s6786_s11 }
 0x251   : > { %p6788_p4 = pnand %p6787_p13, %p7895_p2 }
 0x252   : > { %p6793_p3 = por %p6792_p10, %p6791_p9 }
 0x253   : > { %p6789_p8 = pneg %p6788_p4 }
 0x255   : > { %p6794_p1 = pnand %p6793_p3, %p6789_p8 }
 0x257   : > { %6797 = shalt.err (!%p6794_p1)
}
 0x258   : > { %s6853_s21 = smov 64   ;;  %s6854_s23 = smov 4  }
 0x259   : > { %6459 = dma.vmem_to_hbm [thread:$0]  (%p7895_p2), %s7827_s6, 16384, %s7825_s19, %s4467_s14, %s6853_s21, %s6853_s21, %s6854_s23  }
 0x25a PF: > { %p6486_p6 = scmp.ge.s32.totalorder %s6844_s18, 2  ;;  %s4495_s7 = sand.u32 1, %s6832_s15  }
 0x25b   : > { %p7896_p11 = scmp.ne.s32.totalorder %s7883_s22, 0  ;;  %s4496_s12 = scalar_lea.sflag [#allocation4], %s4495_s7 }
 0x25d   : > { %p6476_p5 = pnand %p6486_p6, %p7896_p11 }
 0x25f   : > { %p6477_p7 = pneg %p6476_p5 }
 0x261   : > { %6827 = dma.done.wait (%p6477_p7), %s4496_s12, 16384  }
 0x262   : > { %6829 = vsyncadd (%p6477_p7), %s4496_s12, 4294950912  ;;  %p19_p12 = scmp.ge.s32.totalorder %s6962_s27, 7   ;;  %s7897_s15 = smov %s6836_s16 }
 0x263   : > { %s7898_s16 = smov %s6840_s17  ;;  %s7899_s17 = smov %s6972_s29 }
 0x264   : > { %s7900_s18 = smov %s6962_s27  ;;  %21 = sbr.rel (!%p19_p12) target bundleno = 7 (0x7), region = 93 }
 0x269   :  { %4501 = vsyncpa [#allocation3], 1 }
 0x26a   :  { %4503 = vsyncpa [#allocation3 + $0x1], 1 }
 0x26b   :  { %4504 = vsyncpa [#allocation6], 1 }
 0x26c   :  { %4505 = vsyncpa [#allocation9], 1 }
 0x26d   :  { %4506 = vsyncpa [#allocation4], 1 }
 0x26e   :  { %4508 = vsyncpa [#allocation4 + $0x1], 1 }

</bundles_post_ra>
